<compile_context>
chip_gen: v5e
topology: v5e:2x2
jax: 0.10.0
libtpu: 0.0.40
codegen_flags: <defaults>
</compile_context>

<pallas_src>
import functools

import jax
import jax.numpy as jnp
from jax.experimental import pallas as pl
from jax.experimental.pallas import tpu as pltpu


def _sigmoid(v):
    # Numerically-stable logistic from exp/abs/where/div (all safe Mosaic lowerings).
    e = jnp.exp(-jnp.abs(v))
    r = 1.0 / (1.0 + e)
    return jnp.where(v >= 0, r, e * r)


def _pick_nb(n, c):
    """Images per grid step: as many as possible while Nb*C stays <= 32 sublanes."""
    cap = max(1, min(8, 32 // max(c, 1)))
    cap = min(cap, n)
    for nb in range(cap, 0, -1):
        if n % nb == 0:
            return nb
    return 1


def _am_kernel(x_ref, wca_ref, b1_ref, b2_ref, w1c_ref, w2c_ref, masks_ref, cmask_ref,
               o_ref, xp_ref, midp_ref, pcol_ref, *, C, Cm, Nb, HW, W, MARG, lf):
    """Fused CA + SA forward for Nb images.

    x_ref    : (Nb, C, H*W)      VMEM input block (lane-dense)
    wca_ref  : (3,)              SMEM Conv1d(1,1,3) weight
    b1_ref   : (Cm,)             SMEM SA conv1 bias
    b2_ref   : (1,)              SMEM SA conv2 bias
    w1c_ref  : (Nb*C, Cm*9)      VMEM SA conv1 weights, pre-tiled per sublane row
    w2c_ref  : (Cm*Nb, 9)        VMEM SA conv2 weights, pre-tiled per sublane row
    masks_ref: (2, H*W)          VMEM row0: zero at w==0, row1: zero at w==W-1
    cmask_ref: (Nb*C, 2)         VMEM channel-boundary masks for the CA 3-tap conv
    o_ref    : (Nb, C, H*W)      VMEM output block
    xp_ref   : (Nb*C, XL)        VMEM padded, channel-gated input (flat layout)
    midp_ref : (Cm*Nb, XL)       VMEM padded hidden activations (flat layout)
    pcol_ref : (Nb*C+2, 1)       VMEM padded pooled column (CA channel conv)
    """
    f32 = jnp.float32
    R = Nb * C
    PAD = W + 1                                   # max |flat shift| of a 3x3 tap

    # -- zero only the read border of the padded scratch (interior rewritten below) --
    zx = jnp.zeros((R, PAD), f32)
    xp_ref[:, MARG - PAD:MARG] = zx
    xp_ref[:, MARG + HW:MARG + HW + PAD] = zx
    zm = jnp.zeros((Cm * Nb, PAD), f32)
    midp_ref[:, MARG - PAD:MARG] = zm
    midp_ref[:, MARG + HW:MARG + HW + PAD] = zm
    pcol_ref[0:1, :] = jnp.zeros((1, 1), f32)
    pcol_ref[R + 1:R + 2, :] = jnp.zeros((1, 1), f32)

    # -------- CA: one lane-dense reduction + vectorised 3-tap channel conv --------
    xb = x_ref[...].astype(f32).reshape(R, HW)            # (Nb*C, H*W)
    if lf:
        pooled = jnp.mean(xb, axis=-1, keepdims=True)     # (Nb*C, 1)
    else:
        pooled = jnp.max(xb, axis=-1, keepdims=True)
    pcol_ref[1:R + 1, :] = pooled
    k0 = wca_ref[0]
    k1 = wca_ref[1]
    k2 = wca_ref[2]
    z = (k0 * pcol_ref[0:R, :] * cmask_ref[:, 0:1]
         + k1 * pooled
         + k2 * pcol_ref[2:R + 2, :] * cmask_ref[:, 1:2])
    gate = _sigmoid(z)                                    # (Nb*C, 1) per-channel gate

    xg = xb * gate                                        # channel-gated input
    xp_ref[:, MARG:MARG + HW] = xg                        # lane-aligned interior store

    mask_l = masks_ref[0:1, :]                            # zeroes output cols w == 0
    mask_r = masks_ref[1:2, :]                            # zeroes output cols w == W-1

    # -------- SA conv1: C -> Cm, 3x3, zero pad, ReLU ------------------------------
    # Flat-shift formulation: tap (kh,kw) = ONE lane-shifted load of the whole
    # (Nb*C, H*W) slab, FMA'd into all Cm accumulators (weights are sublane columns).
    accs = [jnp.zeros((R, HW), f32) for _ in range(Cm)]
    for t in range(9):
        kh, kw = t // 3, t % 3
        off = MARG + (kh - 1) * W + (kw - 1)
        tap = xp_ref[:, off:off + HW]
        if kw == 0:
            tap = tap * mask_l
        elif kw == 2:
            tap = tap * mask_r
        for m in range(Cm):
            accs[m] = accs[m] + w1c_ref[:, m * 9 + t:m * 9 + t + 1] * tap

    for m in range(Cm):
        for n in range(Nb):
            part = jnp.sum(accs[m][n * C:(n + 1) * C, :], axis=0, keepdims=True)
            mid = jnp.maximum(part + b1_ref[m], 0.0)                      # (1, H*W)
            midp_ref[m * Nb + n:m * Nb + n + 1, MARG:MARG + HW] = mid

    # -------- SA conv2: Cm -> 1, 3x3, zero pad ------------------------------------
    acc2 = jnp.zeros((Cm * Nb, HW), f32)
    for t in range(9):
        kh, kw = t // 3, t % 3
        off = MARG + (kh - 1) * W + (kw - 1)
        tap = midp_ref[:, off:off + HW]
        if kw == 0:
            tap = tap * mask_l
        elif kw == 2:
            tap = tap * mask_r
        acc2 = acc2 + w2c_ref[:, t:t + 1] * tap

    # -------- spatial sigmoid gate + final aligned, lane-dense stores -------------
    for n in range(Nb):
        tot = acc2[n:n + 1, :]                            # m = 0 row for image n
        for m in range(1, Cm):
            tot = tot + acc2[m * Nb + n:m * Nb + n + 1, :]
        s_n = _sigmoid(tot + b2_ref[0])                                   # (1, H*W)
        xg_n = x_ref[n].astype(f32) * gate[n * C:(n + 1) * C, :]          # (C, H*W)
        o_ref[n] = (xg_n * s_n).astype(o_ref.dtype)


def am_forward(x, w_ca, w1, b1, w2, b2, *, lf=True):
    """AM.forward: out = SA(CA(x)), fully fused in one Pallas kernel.

    x    : (N, C, H, W) float32
    w_ca : (1, 1, 3)        Conv1d(1, 1, 3, bias=False) weight (CA)
    w1   : (C//4, C, 3, 3)  SA conv1 weight ; b1: (C//4,)
    w2   : (1, C//4, 3, 3)  SA conv2 weight ; b2: (1,)
    """
    n, c, h, w = x.shape
    cm = w1.shape[0]
    hw = h * w
    nb = _pick_nb(n, c)
    pad = w + 1
    marg = ((pad + 127) // 128) * 128                    # lane-aligned interior start
    xl = ((marg + hw + pad + 127) // 128) * 128          # lane-dense scratch width
    f32 = jnp.float32

    x2 = x.reshape(n, c, hw)                             # lane-dense last dim

    # Pre-tiled weight columns (tiny constants; wrapper-side reorg only).
    w1_cols = jnp.tile(
        jnp.transpose(w1, (1, 0, 2, 3)).reshape(c, cm * 9).astype(f32), (nb, 1))
    w2_cols = jnp.repeat(w2.reshape(cm, 9).astype(f32), nb, axis=0)
    col = jnp.arange(hw, dtype=jnp.int32) % w
    masks = jnp.stack([(col != 0), (col != w - 1)], axis=0).astype(f32)
    r = jnp.arange(nb * c, dtype=jnp.int32)
    colmask = jnp.stack([(r % c != 0), (r % c != c - 1)], axis=1).astype(f32)

    kernel = functools.partial(_am_kernel, C=c, Cm=cm, Nb=nb, HW=hw, W=w,
                               MARG=marg, lf=lf)
    smem = pl.BlockSpec(memory_space=pltpu.MemorySpace.SMEM)

    out2 = pl.pallas_call(
        kernel,
        out_shape=jax.ShapeDtypeStruct((n, c, hw), x.dtype),
        grid_spec=pltpu.PrefetchScalarGridSpec(
            num_scalar_prefetch=0,
            grid=(n // nb,),
            in_specs=[
                pl.BlockSpec((nb, c, hw), lambda b: (b, 0, 0)),    # x
                smem,                                              # w_ca (3,)
                smem,                                              # b1   (Cm,)
                smem,                                              # b2   (1,)
                pl.BlockSpec((nb * c, cm * 9), lambda b: (0, 0)),  # conv1 weight cols
                pl.BlockSpec((cm * nb, 9), lambda b: (0, 0)),      # conv2 weight cols
                pl.BlockSpec((2, hw), lambda b: (0, 0)),           # L/R column masks
                pl.BlockSpec((nb * c, 2), lambda b: (0, 0)),       # channel-edge masks
            ],
            out_specs=pl.BlockSpec((nb, c, hw), lambda b: (b, 0, 0)),
            scratch_shapes=[
                pltpu.VMEM((nb * c, xl), jnp.float32),        # padded gated input
                pltpu.VMEM((cm * nb, xl), jnp.float32),       # padded hidden acts
                pltpu.VMEM((nb * c + 2, 1), jnp.float32),     # padded pooled column
            ],
        ),
        compiler_params=pltpu.CompilerParams(
            dimension_semantics=("parallel",),    # batch sharded across TensorCores
        ),
    )(
        x2,
        w_ca.reshape(-1).astype(f32),
        b1.reshape(-1).astype(f32),
        b2.reshape(-1).astype(f32),
        w1_cols, w2_cols, masks, colmask,
    )
    return out2.reshape(n, c, h, w)


def _reference(x, w_ca, w1, b1, w2, b2, *, lf=True):
    """Pure-JAX reference matching the PyTorch AM.forward semantics."""
    if lf:
        y = jnp.mean(x, axis=(2, 3))
    else:
        y = jnp.max(x, axis=(2, 3))
    yp = jnp.pad(y, ((0, 0), (1, 1)))
    k = w_ca.reshape(3)
    z = k[0] * yp[:, :-2] + k[1] * yp[:, 1:-1] + k[2] * yp[:, 2:]
    gate = jax.nn.sigmoid(z)
    x1 = x * gate[:, :, None, None]
    a = jax.lax.conv_general_dilated(
        x1, w1, (1, 1), padding=((1, 1), (1, 1)),
        dimension_numbers=("NCHW", "OIHW", "NCHW")) + b1.reshape(1, -1, 1, 1)
    a = jnp.maximum(a, 0.0)
    s = jax.lax.conv_general_dilated(
        a, w2, (1, 1), padding=((1, 1), (1, 1)),
        dimension_numbers=("NCHW", "OIHW", "NCHW")) + b2.reshape(1, -1, 1, 1)
    s = jax.nn.sigmoid(s)
    return x1 * s


if __name__ == "__main__":
    key = jax.random.PRNGKey(0)
    batch, channels, hw = 2, 8, 16
    cm = channels // 4

    keys = jax.random.split(key, 6)
    x = jax.random.normal(keys[0], (batch, channels, hw, hw), dtype=jnp.float32)
    w_ca = jax.random.normal(keys[1], (1, 1, 3), dtype=jnp.float32) * 0.5
    w1 = jax.random.normal(keys[2], (cm, channels, 3, 3), dtype=jnp.float32) \
        * (1.0 / (channels * 9)) ** 0.5
    b1 = jax.random.normal(keys[3], (cm,), dtype=jnp.float32) * 0.1
    w2 = jax.random.normal(keys[4], (1, cm, 3, 3), dtype=jnp.float32) \
        * (1.0 / (cm * 9)) ** 0.5
    b2 = jax.random.normal(keys[5], (1,), dtype=jnp.float32) * 0.1

    ok = True
    for lf in (True, False):   # lf=True: avg pool, lf=False: max pool
        out = am_forward(x, w_ca, w1, b1, w2, b2, lf=lf)
        out = jax.block_until_ready(out)
        ref = _reference(x, w_ca, w1, b1, w2, b2, lf=lf)
        if out.shape != ref.shape or not jnp.allclose(out, ref, atol=1e-4, rtol=1e-4):
            ok = False
            print(f"MISMATCH lf={lf}: max_err={float(jnp.max(jnp.abs(out - ref)))}")

    if ok:
        print("KERNEL_OK")
</pallas_src>

<mosaic_0001>
module attributes {stable_mosaic.version = 11 : i64} {
  func.func @_am_kernel(%arg0: i32, %arg1: memref<2x8x256xf32, #tpu.memory_space<vmem>>, %arg2: memref<3xf32, #tpu.memory_space<smem>>, %arg3: memref<2xf32, #tpu.memory_space<smem>>, %arg4: memref<1xf32, #tpu.memory_space<smem>>, %arg5: memref<16x18xf32, #tpu.memory_space<vmem>>, %arg6: memref<4x9xf32, #tpu.memory_space<vmem>>, %arg7: memref<2x256xf32, #tpu.memory_space<vmem>>, %arg8: memref<16x2xf32, #tpu.memory_space<vmem>>, %arg9: memref<2x8x256xf32, #tpu.memory_space<vmem>>, %arg10: memref<16x512xf32, #tpu.memory_space<vmem>>, %arg11: memref<4x512xf32, #tpu.memory_space<vmem>>, %arg12: memref<18x1xf32, #tpu.memory_space<vmem>>) attributes {dimension_semantics = [#tpu.dimension_semantics<parallel>], iteration_bounds = array<i64: 1>, scalar_prefetch = 0 : i64, scratch_operands = 3 : i64, tpu.core_type = #tpu.core_type<tc>, window_params = [{transform_indices = @transform_0, window_bounds = array<i64: 2, 8, 256>}, {transform_indices = @transform_1, window_bounds = array<i64: 3>}, {transform_indices = @transform_2, window_bounds = array<i64: 2>}, {transform_indices = @transform_3, window_bounds = array<i64: 1>}, {pipeline_mode = #tpu.pipeline_mode<synchronous>, transform_indices = @transform_4, window_bounds = array<i64: 16, 18>}, {pipeline_mode = #tpu.pipeline_mode<synchronous>, transform_indices = @transform_5, window_bounds = array<i64: 4, 9>}, {pipeline_mode = #tpu.pipeline_mode<synchronous>, transform_indices = @transform_6, window_bounds = array<i64: 2, 256>}, {pipeline_mode = #tpu.pipeline_mode<synchronous>, transform_indices = @transform_7, window_bounds = array<i64: 16, 2>}, {transform_indices = @transform_8, window_bounds = array<i64: 2, 8, 256>}]} {
    %cst = arith.constant 0.000000e+00 : f32
    %0 = vector.broadcast %cst : f32 to vector<16x17xf32>
    %c0 = arith.constant 0 : index
    %c111 = arith.constant 111 : index
    %1 = vector.load %arg10[%c0, %c111] : memref<16x512xf32, #tpu.memory_space<vmem>>, vector<16x17xf32>
    tpu.vector_store %arg10[%c0, %c111], %0 {strides = array<i32>} : memref<16x512xf32, #tpu.memory_space<vmem>>, vector<16x17xf32>,
    %c0_0 = arith.constant 0 : index
    %c384 = arith.constant 384 : index
    %2 = vector.load %arg10[%c0_0, %c384] : memref<16x512xf32, #tpu.memory_space<vmem>>, vector<16x17xf32>
    tpu.vector_store %arg10[%c0_0, %c384], %0 {strides = array<i32>} : memref<16x512xf32, #tpu.memory_space<vmem>>, vector<16x17xf32>,
    %cst_1 = arith.constant 0.000000e+00 : f32
    %3 = vector.broadcast %cst_1 : f32 to vector<4x17xf32>
    %c0_2 = arith.constant 0 : index
    %c111_3 = arith.constant 111 : index
    %4 = vector.load %arg11[%c0_2, %c111_3] : memref<4x512xf32, #tpu.memory_space<vmem>>, vector<4x17xf32>
    tpu.vector_store %arg11[%c0_2, %c111_3], %3 {strides = array<i32>} : memref<4x512xf32, #tpu.memory_space<vmem>>, vector<4x17xf32>,
    %c0_4 = arith.constant 0 : index
    %c384_5 = arith.constant 384 : index
    %5 = vector.load %arg11[%c0_4, %c384_5] : memref<4x512xf32, #tpu.memory_space<vmem>>, vector<4x17xf32>
    tpu.vector_store %arg11[%c0_4, %c384_5], %3 {strides = array<i32>} : memref<4x512xf32, #tpu.memory_space<vmem>>, vector<4x17xf32>,
    %cst_6 = arith.constant 0.000000e+00 : f32
    %6 = vector.broadcast %cst_6 : f32 to vector<1x1xf32>
    %c0_7 = arith.constant 0 : index
    %c0_8 = arith.constant 0 : index
    %7 = vector.load %arg12[%c0_7, %c0_8] : memref<18x1xf32, #tpu.memory_space<vmem>>, vector<1x1xf32>
    tpu.vector_store %arg12[%c0_7, %c0_8], %6 {strides = array<i32>} : memref<18x1xf32, #tpu.memory_space<vmem>>, vector<1x1xf32>,
    %cst_9 = arith.constant 0.000000e+00 : f32
    %8 = vector.broadcast %cst_9 : f32 to vector<1x1xf32>
    %c17 = arith.constant 17 : index
    %c0_10 = arith.constant 0 : index
    %9 = vector.load %arg12[%c17, %c0_10] : memref<18x1xf32, #tpu.memory_space<vmem>>, vector<1x1xf32>
    tpu.vector_store %arg12[%c17, %c0_10], %8 {strides = array<i32>} : memref<18x1xf32, #tpu.memory_space<vmem>>, vector<1x1xf32>,
    %c0_11 = arith.constant 0 : index
    %c0_12 = arith.constant 0 : index
    %c0_13 = arith.constant 0 : index
    %10 = vector.load %arg1[%c0_11, %c0_12, %c0_13] : memref<2x8x256xf32, #tpu.memory_space<vmem>>, vector<2x8x256xf32>
    %11 = vector.shape_cast %10 : vector<2x8x256xf32> to vector<16x256xf32>
    %cst_14 = arith.constant dense<0.000000e+00> : vector<16xf32>
    %12 = vector.multi_reduction <add>, %11, %cst_14 [1] : vector<16x256xf32> to vector<16xf32>
    %13 = vector.shape_cast %12 : vector<16xf32> to vector<16x1xf32>
    %cst_15 = arith.constant 2.560000e+02 : f32
    %14 = vector.broadcast %cst_15 : f32 to vector<16x1xf32>
    %15 = arith.divf %13, %14 : vector<16x1xf32>
    %c1 = arith.constant 1 : index
    %c0_16 = arith.constant 0 : index
    %16 = vector.load %arg12[%c1, %c0_16] : memref<18x1xf32, #tpu.memory_space<vmem>>, vector<16x1xf32>
    tpu.vector_store %arg12[%c1, %c0_16], %15 {strides = array<i32>} : memref<18x1xf32, #tpu.memory_space<vmem>>, vector<16x1xf32>,
    %c0_17 = arith.constant 0 : index
    %17 = memref.load %arg2[%c0_17] : memref<3xf32, #tpu.memory_space<smem>>
    %c1_18 = arith.constant 1 : index
    %18 = memref.load %arg2[%c1_18] : memref<3xf32, #tpu.memory_space<smem>>
    %c2 = arith.constant 2 : index
    %19 = memref.load %arg2[%c2] : memref<3xf32, #tpu.memory_space<smem>>
    %c0_19 = arith.constant 0 : index
    %c0_20 = arith.constant 0 : index
    %20 = vector.load %arg12[%c0_19, %c0_20] : memref<18x1xf32, #tpu.memory_space<vmem>>, vector<16x1xf32>
    %21 = vector.broadcast %17 : f32 to vector<16x1xf32>
    %22 = arith.mulf %21, %20 : vector<16x1xf32>
    %c0_21 = arith.constant 0 : index
    %c0_22 = arith.constant 0 : index
    %23 = vector.load %arg8[%c0_21, %c0_22] : memref<16x2xf32, #tpu.memory_space<vmem>>, vector<16x1xf32>
    %24 = arith.mulf %22, %23 : vector<16x1xf32>
    %25 = vector.broadcast %18 : f32 to vector<16x1xf32>
    %26 = arith.mulf %25, %15 : vector<16x1xf32>
    %27 = arith.addf %24, %26 : vector<16x1xf32>
    %c2_23 = arith.constant 2 : index
    %c0_24 = arith.constant 0 : index
    %28 = vector.load %arg12[%c2_23, %c0_24] : memref<18x1xf32, #tpu.memory_space<vmem>>, vector<16x1xf32>
    %29 = vector.broadcast %19 : f32 to vector<16x1xf32>
    %30 = arith.mulf %29, %28 : vector<16x1xf32>
    %c0_25 = arith.constant 0 : index
    %c1_26 = arith.constant 1 : index
    %31 = vector.load %arg8[%c0_25, %c1_26] : memref<16x2xf32, #tpu.memory_space<vmem>>, vector<16x1xf32>
    %32 = arith.mulf %30, %31 : vector<16x1xf32>
    %33 = arith.addf %27, %32 : vector<16x1xf32>
    %34 = math.absf %33 : vector<16x1xf32>
    %cst_27 = arith.constant 0.000000e+00 : f32
    %35 = vector.broadcast %cst_27 : f32 to vector<16x1xf32>
    %36 = arith.subf %35, %34 : vector<16x1xf32>
    %37 = math.exp %36 : vector<16x1xf32>
    %cst_28 = arith.constant 1.000000e+00 : f32
    %38 = vector.broadcast %cst_28 : f32 to vector<16x1xf32>
    %39 = arith.addf %38, %37 : vector<16x1xf32>
    %cst_29 = arith.constant 1.000000e+00 : f32
    %40 = vector.broadcast %cst_29 : f32 to vector<16x1xf32>
    %41 = arith.divf %40, %39 : vector<16x1xf32>
    %cst_30 = arith.constant 0.000000e+00 : f32
    %42 = vector.broadcast %cst_30 : f32 to vector<16x1xf32>
    %43 = arith.cmpf oge, %33, %42 : vector<16x1xf32>
    %44 = arith.mulf %37, %41 : vector<16x1xf32>
    %45 = arith.select %43, %41, %44 : vector<16x1xi1>, vector<16x1xf32>
    %46 = vector.broadcast %45 : vector<16x1xf32> to vector<16x256xf32>
    %47 = arith.mulf %11, %46 : vector<16x256xf32>
    %c0_31 = arith.constant 0 : index
    %c128 = arith.constant 128 : index
    %48 = vector.load %arg10[%c0_31, %c128] : memref<16x512xf32, #tpu.memory_space<vmem>>, vector<16x256xf32>
    tpu.vector_store %arg10[%c0_31, %c128], %47 {strides = array<i32>} : memref<16x512xf32, #tpu.memory_space<vmem>>, vector<16x256xf32>,
    %c0_32 = arith.constant 0 : index
    %c0_33 = arith.constant 0 : index
    %49 = vector.load %arg7[%c0_32, %c0_33] : memref<2x256xf32, #tpu.memory_space<vmem>>, vector<1x256xf32>
    %c1_34 = arith.constant 1 : index
    %c0_35 = arith.constant 0 : index
    %50 = vector.load %arg7[%c1_34, %c0_35] : memref<2x256xf32, #tpu.memory_space<vmem>>, vector<1x256xf32>
    %cst_36 = arith.constant 0.000000e+00 : f32
    %51 = vector.broadcast %cst_36 : f32 to vector<16x256xf32>
    %cst_37 = arith.constant 0.000000e+00 : f32
    %52 = vector.broadcast %cst_37 : f32 to vector<16x256xf32>
    %c0_38 = arith.constant 0 : index
    %c111_39 = arith.constant 111 : index
    %53 = vector.load %arg10[%c0_38, %c111_39] : memref<16x512xf32, #tpu.memory_space<vmem>>, vector<16x256xf32>
    %54 = vector.broadcast %49 : vector<1x256xf32> to vector<16x256xf32>
    %55 = arith.mulf %53, %54 : vector<16x256xf32>
    %c0_40 = arith.constant 0 : index
    %c0_41 = arith.constant 0 : index
    %56 = vector.load %arg5[%c0_40, %c0_41] : memref<16x18xf32, #tpu.memory_space<vmem>>, vector<16x1xf32>
    %57 = vector.broadcast %56 : vector<16x1xf32> to vector<16x256xf32>
    %58 = arith.mulf %57, %55 : vector<16x256xf32>
    %59 = arith.addf %51, %58 : vector<16x256xf32>
    %c0_42 = arith.constant 0 : index
    %c9 = arith.constant 9 : index
    %60 = vector.load %arg5[%c0_42, %c9] : memref<16x18xf32, #tpu.memory_space<vmem>>, vector<16x1xf32>
    %61 = vector.broadcast %60 : vector<16x1xf32> to vector<16x256xf32>
    %62 = arith.mulf %61, %55 : vector<16x256xf32>
    %63 = arith.addf %52, %62 : vector<16x256xf32>
    %c0_43 = arith.constant 0 : index
    %c112 = arith.constant 112 : index
    %64 = vector.load %arg10[%c0_43, %c112] : memref<16x512xf32, #tpu.memory_space<vmem>>, vector<16x256xf32>
    %c0_44 = arith.constant 0 : index
    %c1_45 = arith.constant 1 : index
    %65 = vector.load %arg5[%c0_44, %c1_45] : memref<16x18xf32, #tpu.memory_space<vmem>>, vector<16x1xf32>
    %66 = vector.broadcast %65 : vector<16x1xf32> to vector<16x256xf32>
    %67 = arith.mulf %66, %64 : vector<16x256xf32>
    %68 = arith.addf %59, %67 : vector<16x256xf32>
    %c0_46 = arith.constant 0 : index
    %c10 = arith.constant 10 : index
    %69 = vector.load %arg5[%c0_46, %c10] : memref<16x18xf32, #tpu.memory_space<vmem>>, vector<16x1xf32>
    %70 = vector.broadcast %69 : vector<16x1xf32> to vector<16x256xf32>
    %71 = arith.mulf %70, %64 : vector<16x256xf32>
    %72 = arith.addf %63, %71 : vector<16x256xf32>
    %c0_47 = arith.constant 0 : index
    %c113 = arith.constant 113 : index
    %73 = vector.load %arg10[%c0_47, %c113] : memref<16x512xf32, #tpu.memory_space<vmem>>, vector<16x256xf32>
    %74 = vector.broadcast %50 : vector<1x256xf32> to vector<16x256xf32>
    %75 = arith.mulf %73, %74 : vector<16x256xf32>
    %c0_48 = arith.constant 0 : index
    %c2_49 = arith.constant 2 : index
    %76 = vector.load %arg5[%c0_48, %c2_49] : memref<16x18xf32, #tpu.memory_space<vmem>>, vector<16x1xf32>
    %77 = vector.broadcast %76 : vector<16x1xf32> to vector<16x256xf32>
    %78 = arith.mulf %77, %75 : vector<16x256xf32>
    %79 = arith.addf %68, %78 : vector<16x256xf32>
    %c0_50 = arith.constant 0 : index
    %c11 = arith.constant 11 : index
    %80 = vector.load %arg5[%c0_50, %c11] : memref<16x18xf32, #tpu.memory_space<vmem>>, vector<16x1xf32>
    %81 = vector.broadcast %80 : vector<16x1xf32> to vector<16x256xf32>
    %82 = arith.mulf %81, %75 : vector<16x256xf32>
    %83 = arith.addf %72, %82 : vector<16x256xf32>
    %c0_51 = arith.constant 0 : index
    %c127 = arith.constant 127 : index
    %84 = vector.load %arg10[%c0_51, %c127] : memref<16x512xf32, #tpu.memory_space<vmem>>, vector<16x256xf32>
    %85 = vector.broadcast %49 : vector<1x256xf32> to vector<16x256xf32>
    %86 = arith.mulf %84, %85 : vector<16x256xf32>
    %c0_52 = arith.constant 0 : index
    %c3 = arith.constant 3 : index
    %87 = vector.load %arg5[%c0_52, %c3] : memref<16x18xf32, #tpu.memory_space<vmem>>, vector<16x1xf32>
    %88 = vector.broadcast %87 : vector<16x1xf32> to vector<16x256xf32>
    %89 = arith.mulf %88, %86 : vector<16x256xf32>
    %90 = arith.addf %79, %89 : vector<16x256xf32>
    %c0_53 = arith.constant 0 : index
    %c12 = arith.constant 12 : index
    %91 = vector.load %arg5[%c0_53, %c12] : memref<16x18xf32, #tpu.memory_space<vmem>>, vector<16x1xf32>
    %92 = vector.broadcast %91 : vector<16x1xf32> to vector<16x256xf32>
    %93 = arith.mulf %92, %86 : vector<16x256xf32>
    %94 = arith.addf %83, %93 : vector<16x256xf32>
    %c0_54 = arith.constant 0 : index
    %c128_55 = arith.constant 128 : index
    %95 = vector.load %arg10[%c0_54, %c128_55] : memref<16x512xf32, #tpu.memory_space<vmem>>, vector<16x256xf32>
    %c0_56 = arith.constant 0 : index
    %c4 = arith.constant 4 : index
    %96 = vector.load %arg5[%c0_56, %c4] : memref<16x18xf32, #tpu.memory_space<vmem>>, vector<16x1xf32>
    %97 = vector.broadcast %96 : vector<16x1xf32> to vector<16x256xf32>
    %98 = arith.mulf %97, %95 : vector<16x256xf32>
    %99 = arith.addf %90, %98 : vector<16x256xf32>
    %c0_57 = arith.constant 0 : index
    %c13 = arith.constant 13 : index
    %100 = vector.load %arg5[%c0_57, %c13] : memref<16x18xf32, #tpu.memory_space<vmem>>, vector<16x1xf32>
    %101 = vector.broadcast %100 : vector<16x1xf32> to vector<16x256xf32>
    %102 = arith.mulf %101, %95 : vector<16x256xf32>
    %103 = arith.addf %94, %102 : vector<16x256xf32>
    %c0_58 = arith.constant 0 : index
    %c129 = arith.constant 129 : index
    %104 = vector.load %arg10[%c0_58, %c129] : memref<16x512xf32, #tpu.memory_space<vmem>>, vector<16x256xf32>
    %105 = vector.broadcast %50 : vector<1x256xf32> to vector<16x256xf32>
    %106 = arith.mulf %104, %105 : vector<16x256xf32>
    %c0_59 = arith.constant 0 : index
    %c5 = arith.constant 5 : index
    %107 = vector.load %arg5[%c0_59, %c5] : memref<16x18xf32, #tpu.memory_space<vmem>>, vector<16x1xf32>
    %108 = vector.broadcast %107 : vector<16x1xf32> to vector<16x256xf32>
    %109 = arith.mulf %108, %106 : vector<16x256xf32>
    %110 = arith.addf %99, %109 : vector<16x256xf32>
    %c0_60 = arith.constant 0 : index
    %c14 = arith.constant 14 : index
    %111 = vector.load %arg5[%c0_60, %c14] : memref<16x18xf32, #tpu.memory_space<vmem>>, vector<16x1xf32>
    %112 = vector.broadcast %111 : vector<16x1xf32> to vector<16x256xf32>
    %113 = arith.mulf %112, %106 : vector<16x256xf32>
    %114 = arith.addf %103, %113 : vector<16x256xf32>
    %c0_61 = arith.constant 0 : index
    %c143 = arith.constant 143 : index
    %115 = vector.load %arg10[%c0_61, %c143] : memref<16x512xf32, #tpu.memory_space<vmem>>, vector<16x256xf32>
    %116 = vector.broadcast %49 : vector<1x256xf32> to vector<16x256xf32>
    %117 = arith.mulf %115, %116 : vector<16x256xf32>
    %c0_62 = arith.constant 0 : index
    %c6 = arith.constant 6 : index
    %118 = vector.load %arg5[%c0_62, %c6] : memref<16x18xf32, #tpu.memory_space<vmem>>, vector<16x1xf32>
    %119 = vector.broadcast %118 : vector<16x1xf32> to vector<16x256xf32>
    %120 = arith.mulf %119, %117 : vector<16x256xf32>
    %121 = arith.addf %110, %120 : vector<16x256xf32>
    %c0_63 = arith.constant 0 : index
    %c15 = arith.constant 15 : index
    %122 = vector.load %arg5[%c0_63, %c15] : memref<16x18xf32, #tpu.memory_space<vmem>>, vector<16x1xf32>
    %123 = vector.broadcast %122 : vector<16x1xf32> to vector<16x256xf32>
    %124 = arith.mulf %123, %117 : vector<16x256xf32>
    %125 = arith.addf %114, %124 : vector<16x256xf32>
    %c0_64 = arith.constant 0 : index
    %c144 = arith.constant 144 : index
    %126 = vector.load %arg10[%c0_64, %c144] : memref<16x512xf32, #tpu.memory_space<vmem>>, vector<16x256xf32>
    %c0_65 = arith.constant 0 : index
    %c7 = arith.constant 7 : index
    %127 = vector.load %arg5[%c0_65, %c7] : memref<16x18xf32, #tpu.memory_space<vmem>>, vector<16x1xf32>
    %128 = vector.broadcast %127 : vector<16x1xf32> to vector<16x256xf32>
    %129 = arith.mulf %128, %126 : vector<16x256xf32>
    %130 = arith.addf %121, %129 : vector<16x256xf32>
    %c0_66 = arith.constant 0 : index
    %c16 = arith.constant 16 : index
    %131 = vector.load %arg5[%c0_66, %c16] : memref<16x18xf32, #tpu.memory_space<vmem>>, vector<16x1xf32>
    %132 = vector.broadcast %131 : vector<16x1xf32> to vector<16x256xf32>
    %133 = arith.mulf %132, %126 : vector<16x256xf32>
    %134 = arith.addf %125, %133 : vector<16x256xf32>
    %c0_67 = arith.constant 0 : index
    %c145 = arith.constant 145 : index
    %135 = vector.load %arg10[%c0_67, %c145] : memref<16x512xf32, #tpu.memory_space<vmem>>, vector<16x256xf32>
    %136 = vector.broadcast %50 : vector<1x256xf32> to vector<16x256xf32>
    %137 = arith.mulf %135, %136 : vector<16x256xf32>
    %c0_68 = arith.constant 0 : index
    %c8 = arith.constant 8 : index
    %138 = vector.load %arg5[%c0_68, %c8] : memref<16x18xf32, #tpu.memory_space<vmem>>, vector<16x1xf32>
    %139 = vector.broadcast %138 : vector<16x1xf32> to vector<16x256xf32>
    %140 = arith.mulf %139, %137 : vector<16x256xf32>
    %141 = arith.addf %130, %140 : vector<16x256xf32>
    %c0_69 = arith.constant 0 : index
    %c17_70 = arith.constant 17 : index
    %142 = vector.load %arg5[%c0_69, %c17_70] : memref<16x18xf32, #tpu.memory_space<vmem>>, vector<16x1xf32>
    %143 = vector.broadcast %142 : vector<16x1xf32> to vector<16x256xf32>
    %144 = arith.mulf %143, %137 : vector<16x256xf32>
    %145 = arith.addf %134, %144 : vector<16x256xf32>
    %146 = vector.extract_strided_slice %141 {offsets = [0, 0], sizes = [8, 256], strides = [1, 1]} : vector<16x256xf32> to vector<8x256xf32>
    %cst_71 = arith.constant dense<0.000000e+00> : vector<256xf32>
    %147 = vector.multi_reduction <add>, %146, %cst_71 [0] : vector<8x256xf32> to vector<256xf32>
    %148 = vector.shape_cast %147 : vector<256xf32> to vector<1x256xf32>
    %c0_72 = arith.constant 0 : index
    %149 = memref.load %arg3[%c0_72] : memref<2xf32, #tpu.memory_space<smem>>
    %150 = vector.broadcast %149 : f32 to vector<1x256xf32>
    %151 = arith.addf %148, %150 : vector<1x256xf32>
    %cst_73 = arith.constant 0.000000e+00 : f32
    %152 = vector.broadcast %cst_73 : f32 to vector<1x256xf32>
    %153 = arith.maximumf %151, %152 : vector<1x256xf32>
    %c0_74 = arith.constant 0 : index
    %c128_75 = arith.constant 128 : index
    %154 = vector.load %arg11[%c0_74, %c128_75] : memref<4x512xf32, #tpu.memory_space<vmem>>, vector<1x256xf32>
    tpu.vector_store %arg11[%c0_74, %c128_75], %153 {strides = array<i32>} : memref<4x512xf32, #tpu.memory_space<vmem>>, vector<1x256xf32>,
    %155 = vector.extract_strided_slice %141 {offsets = [8, 0], sizes = [8, 256], strides = [1, 1]} : vector<16x256xf32> to vector<8x256xf32>
    %cst_76 = arith.constant dense<0.000000e+00> : vector<256xf32>
    %156 = vector.multi_reduction <add>, %155, %cst_76 [0] : vector<8x256xf32> to vector<256xf32>
    %157 = vector.shape_cast %156 : vector<256xf32> to vector<1x256xf32>
    %c0_77 = arith.constant 0 : index
    %158 = memref.load %arg3[%c0_77] : memref<2xf32, #tpu.memory_space<smem>>
    %159 = vector.broadcast %158 : f32 to vector<1x256xf32>
    %160 = arith.addf %157, %159 : vector<1x256xf32>
    %cst_78 = arith.constant 0.000000e+00 : f32
    %161 = vector.broadcast %cst_78 : f32 to vector<1x256xf32>
    %162 = arith.maximumf %160, %161 : vector<1x256xf32>
    %c1_79 = arith.constant 1 : index
    %c128_80 = arith.constant 128 : index
    %163 = vector.load %arg11[%c1_79, %c128_80] : memref<4x512xf32, #tpu.memory_space<vmem>>, vector<1x256xf32>
    tpu.vector_store %arg11[%c1_79, %c128_80], %162 {strides = array<i32>} : memref<4x512xf32, #tpu.memory_space<vmem>>, vector<1x256xf32>,
    %164 = vector.extract_strided_slice %145 {offsets = [0, 0], sizes = [8, 256], strides = [1, 1]} : vector<16x256xf32> to vector<8x256xf32>
    %cst_81 = arith.constant dense<0.000000e+00> : vector<256xf32>
    %165 = vector.multi_reduction <add>, %164, %cst_81 [0] : vector<8x256xf32> to vector<256xf32>
    %166 = vector.shape_cast %165 : vector<256xf32> to vector<1x256xf32>
    %c1_82 = arith.constant 1 : index
    %167 = memref.load %arg3[%c1_82] : memref<2xf32, #tpu.memory_space<smem>>
    %168 = vector.broadcast %167 : f32 to vector<1x256xf32>
    %169 = arith.addf %166, %168 : vector<1x256xf32>
    %cst_83 = arith.constant 0.000000e+00 : f32
    %170 = vector.broadcast %cst_83 : f32 to vector<1x256xf32>
    %171 = arith.maximumf %169, %170 : vector<1x256xf32>
    %c2_84 = arith.constant 2 : index
    %c128_85 = arith.constant 128 : index
    %172 = vector.load %arg11[%c2_84, %c128_85] : memref<4x512xf32, #tpu.memory_space<vmem>>, vector<1x256xf32>
    tpu.vector_store %arg11[%c2_84, %c128_85], %171 {strides = array<i32>} : memref<4x512xf32, #tpu.memory_space<vmem>>, vector<1x256xf32>,
    %173 = vector.extract_strided_slice %145 {offsets = [8, 0], sizes = [8, 256], strides = [1, 1]} : vector<16x256xf32> to vector<8x256xf32>
    %cst_86 = arith.constant dense<0.000000e+00> : vector<256xf32>
    %174 = vector.multi_reduction <add>, %173, %cst_86 [0] : vector<8x256xf32> to vector<256xf32>
    %175 = vector.shape_cast %174 : vector<256xf32> to vector<1x256xf32>
    %c1_87 = arith.constant 1 : index
    %176 = memref.load %arg3[%c1_87] : memref<2xf32, #tpu.memory_space<smem>>
    %177 = vector.broadcast %176 : f32 to vector<1x256xf32>
    %178 = arith.addf %175, %177 : vector<1x256xf32>
    %cst_88 = arith.constant 0.000000e+00 : f32
    %179 = vector.broadcast %cst_88 : f32 to vector<1x256xf32>
    %180 = arith.maximumf %178, %179 : vector<1x256xf32>
    %c3_89 = arith.constant 3 : index
    %c128_90 = arith.constant 128 : index
    %181 = vector.load %arg11[%c3_89, %c128_90] : memref<4x512xf32, #tpu.memory_space<vmem>>, vector<1x256xf32>
    tpu.vector_store %arg11[%c3_89, %c128_90], %180 {strides = array<i32>} : memref<4x512xf32, #tpu.memory_space<vmem>>, vector<1x256xf32>,
    %cst_91 = arith.constant 0.000000e+00 : f32
    %182 = vector.broadcast %cst_91 : f32 to vector<4x256xf32>
    %c0_92 = arith.constant 0 : index
    %c111_93 = arith.constant 111 : index
    %183 = vector.load %arg11[%c0_92, %c111_93] : memref<4x512xf32, #tpu.memory_space<vmem>>, vector<4x256xf32>
    %184 = vector.broadcast %49 : vector<1x256xf32> to vector<4x256xf32>
    %185 = arith.mulf %183, %184 : vector<4x256xf32>
    %c0_94 = arith.constant 0 : index
    %c0_95 = arith.constant 0 : index
    %186 = vector.load %arg6[%c0_94, %c0_95] : memref<4x9xf32, #tpu.memory_space<vmem>>, vector<4x1xf32>
    %187 = vector.broadcast %186 : vector<4x1xf32> to vector<4x256xf32>
    %188 = arith.mulf %187, %185 : vector<4x256xf32>
    %189 = arith.addf %182, %188 : vector<4x256xf32>
    %c0_96 = arith.constant 0 : index
    %c112_97 = arith.constant 112 : index
    %190 = vector.load %arg11[%c0_96, %c112_97] : memref<4x512xf32, #tpu.memory_space<vmem>>, vector<4x256xf32>
    %c0_98 = arith.constant 0 : index
    %c1_99 = arith.constant 1 : index
    %191 = vector.load %arg6[%c0_98, %c1_99] : memref<4x9xf32, #tpu.memory_space<vmem>>, vector<4x1xf32>
    %192 = vector.broadcast %191 : vector<4x1xf32> to vector<4x256xf32>
    %193 = arith.mulf %192, %190 : vector<4x256xf32>
    %194 = arith.addf %189, %193 : vector<4x256xf32>
    %c0_100 = arith.constant 0 : index
    %c113_101 = arith.constant 113 : index
    %195 = vector.load %arg11[%c0_100, %c113_101] : memref<4x512xf32, #tpu.memory_space<vmem>>, vector<4x256xf32>
    %196 = vector.broadcast %50 : vector<1x256xf32> to vector<4x256xf32>
    %197 = arith.mulf %195, %196 : vector<4x256xf32>
    %c0_102 = arith.constant 0 : index
    %c2_103 = arith.constant 2 : index
    %198 = vector.load %arg6[%c0_102, %c2_103] : memref<4x9xf32, #tpu.memory_space<vmem>>, vector<4x1xf32>
    %199 = vector.broadcast %198 : vector<4x1xf32> to vector<4x256xf32>
    %200 = arith.mulf %199, %197 : vector<4x256xf32>
    %201 = arith.addf %194, %200 : vector<4x256xf32>
    %c0_104 = arith.constant 0 : index
    %c127_105 = arith.constant 127 : index
    %202 = vector.load %arg11[%c0_104, %c127_105] : memref<4x512xf32, #tpu.memory_space<vmem>>, vector<4x256xf32>
    %203 = vector.broadcast %49 : vector<1x256xf32> to vector<4x256xf32>
    %204 = arith.mulf %202, %203 : vector<4x256xf32>
    %c0_106 = arith.constant 0 : index
    %c3_107 = arith.constant 3 : index
    %205 = vector.load %arg6[%c0_106, %c3_107] : memref<4x9xf32, #tpu.memory_space<vmem>>, vector<4x1xf32>
    %206 = vector.broadcast %205 : vector<4x1xf32> to vector<4x256xf32>
    %207 = arith.mulf %206, %204 : vector<4x256xf32>
    %208 = arith.addf %201, %207 : vector<4x256xf32>
    %c0_108 = arith.constant 0 : index
    %c128_109 = arith.constant 128 : index
    %209 = vector.load %arg11[%c0_108, %c128_109] : memref<4x512xf32, #tpu.memory_space<vmem>>, vector<4x256xf32>
    %c0_110 = arith.constant 0 : index
    %c4_111 = arith.constant 4 : index
    %210 = vector.load %arg6[%c0_110, %c4_111] : memref<4x9xf32, #tpu.memory_space<vmem>>, vector<4x1xf32>
    %211 = vector.broadcast %210 : vector<4x1xf32> to vector<4x256xf32>
    %212 = arith.mulf %211, %209 : vector<4x256xf32>
    %213 = arith.addf %208, %212 : vector<4x256xf32>
    %c0_112 = arith.constant 0 : index
    %c129_113 = arith.constant 129 : index
    %214 = vector.load %arg11[%c0_112, %c129_113] : memref<4x512xf32, #tpu.memory_space<vmem>>, vector<4x256xf32>
    %215 = vector.broadcast %50 : vector<1x256xf32> to vector<4x256xf32>
    %216 = arith.mulf %214, %215 : vector<4x256xf32>
    %c0_114 = arith.constant 0 : index
    %c5_115 = arith.constant 5 : index
    %217 = vector.load %arg6[%c0_114, %c5_115] : memref<4x9xf32, #tpu.memory_space<vmem>>, vector<4x1xf32>
    %218 = vector.broadcast %217 : vector<4x1xf32> to vector<4x256xf32>
    %219 = arith.mulf %218, %216 : vector<4x256xf32>
    %220 = arith.addf %213, %219 : vector<4x256xf32>
    %c0_116 = arith.constant 0 : index
    %c143_117 = arith.constant 143 : index
    %221 = vector.load %arg11[%c0_116, %c143_117] : memref<4x512xf32, #tpu.memory_space<vmem>>, vector<4x256xf32>
    %222 = vector.broadcast %49 : vector<1x256xf32> to vector<4x256xf32>
    %223 = arith.mulf %221, %222 : vector<4x256xf32>
    %c0_118 = arith.constant 0 : index
    %c6_119 = arith.constant 6 : index
    %224 = vector.load %arg6[%c0_118, %c6_119] : memref<4x9xf32, #tpu.memory_space<vmem>>, vector<4x1xf32>
    %225 = vector.broadcast %224 : vector<4x1xf32> to vector<4x256xf32>
    %226 = arith.mulf %225, %223 : vector<4x256xf32>
    %227 = arith.addf %220, %226 : vector<4x256xf32>
    %c0_120 = arith.constant 0 : index
    %c144_121 = arith.constant 144 : index
    %228 = vector.load %arg11[%c0_120, %c144_121] : memref<4x512xf32, #tpu.memory_space<vmem>>, vector<4x256xf32>
    %c0_122 = arith.constant 0 : index
    %c7_123 = arith.constant 7 : index
    %229 = vector.load %arg6[%c0_122, %c7_123] : memref<4x9xf32, #tpu.memory_space<vmem>>, vector<4x1xf32>
    %230 = vector.broadcast %229 : vector<4x1xf32> to vector<4x256xf32>
    %231 = arith.mulf %230, %228 : vector<4x256xf32>
    %232 = arith.addf %227, %231 : vector<4x256xf32>
    %c0_124 = arith.constant 0 : index
    %c145_125 = arith.constant 145 : index
    %233 = vector.load %arg11[%c0_124, %c145_125] : memref<4x512xf32, #tpu.memory_space<vmem>>, vector<4x256xf32>
    %234 = vector.broadcast %50 : vector<1x256xf32> to vector<4x256xf32>
    %235 = arith.mulf %233, %234 : vector<4x256xf32>
    %c0_126 = arith.constant 0 : index
    %c8_127 = arith.constant 8 : index
    %236 = vector.load %arg6[%c0_126, %c8_127] : memref<4x9xf32, #tpu.memory_space<vmem>>, vector<4x1xf32>
    %237 = vector.broadcast %236 : vector<4x1xf32> to vector<4x256xf32>
    %238 = arith.mulf %237, %235 : vector<4x256xf32>
    %239 = arith.addf %232, %238 : vector<4x256xf32>
    %240 = vector.extract_strided_slice %239 {offsets = [0, 0], sizes = [1, 256], strides = [1, 1]} : vector<4x256xf32> to vector<1x256xf32>
    %241 = vector.extract_strided_slice %239 {offsets = [2, 0], sizes = [1, 256], strides = [1, 1]} : vector<4x256xf32> to vector<1x256xf32>
    %242 = arith.addf %240, %241 : vector<1x256xf32>
    %c0_128 = arith.constant 0 : index
    %243 = memref.load %arg4[%c0_128] : memref<1xf32, #tpu.memory_space<smem>>
    %244 = vector.broadcast %243 : f32 to vector<1x256xf32>
    %245 = arith.addf %242, %244 : vector<1x256xf32>
    %246 = math.absf %245 : vector<1x256xf32>
    %cst_129 = arith.constant 0.000000e+00 : f32
    %247 = vector.broadcast %cst_129 : f32 to vector<1x256xf32>
    %248 = arith.subf %247, %246 : vector<1x256xf32>
    %249 = math.exp %248 : vector<1x256xf32>
    %cst_130 = arith.constant 1.000000e+00 : f32
    %250 = vector.broadcast %cst_130 : f32 to vector<1x256xf32>
    %251 = arith.addf %250, %249 : vector<1x256xf32>
    %cst_131 = arith.constant 1.000000e+00 : f32
    %252 = vector.broadcast %cst_131 : f32 to vector<1x256xf32>
    %253 = arith.divf %252, %251 : vector<1x256xf32>
    %cst_132 = arith.constant 0.000000e+00 : f32
    %254 = vector.broadcast %cst_132 : f32 to vector<1x256xf32>
    %255 = arith.cmpf oge, %245, %254 : vector<1x256xf32>
    %256 = arith.mulf %249, %253 : vector<1x256xf32>
    %257 = arith.select %255, %253, %256 : vector<1x256xi1>, vector<1x256xf32>
    %c0_133 = arith.constant 0 : index
    %c0_134 = arith.constant 0 : index
    %c0_135 = arith.constant 0 : index
    %258 = vector.load %arg1[%c0_133, %c0_134, %c0_135] : memref<2x8x256xf32, #tpu.memory_space<vmem>>, vector<1x8x256xf32>
    %259 = vector.shape_cast %258 : vector<1x8x256xf32> to vector<8x256xf32>
    %260 = vector.extract_strided_slice %45 {offsets = [0, 0], sizes = [8, 1], strides = [1, 1]} : vector<16x1xf32> to vector<8x1xf32>
    %261 = vector.broadcast %260 : vector<8x1xf32> to vector<8x256xf32>
    %262 = arith.mulf %259, %261 : vector<8x256xf32>
    %263 = vector.broadcast %257 : vector<1x256xf32> to vector<8x256xf32>
    %264 = arith.mulf %262, %263 : vector<8x256xf32>
    %c0_136 = arith.constant 0 : index
    %c0_137 = arith.constant 0 : index
    %c0_138 = arith.constant 0 : index
    %265 = vector.load %arg9[%c0_136, %c0_137, %c0_138] : memref<2x8x256xf32, #tpu.memory_space<vmem>>, vector<1x8x256xf32>
    %266 = vector.shape_cast %265 : vector<1x8x256xf32> to vector<8x256xf32>
    %267 = vector.shape_cast %264 : vector<8x256xf32> to vector<1x8x256xf32>
    tpu.vector_store %arg9[%c0_136, %c0_137, %c0_138], %267 {strides = array<i32>} : memref<2x8x256xf32, #tpu.memory_space<vmem>>, vector<1x8x256xf32>,
    %268 = vector.extract_strided_slice %239 {offsets = [1, 0], sizes = [1, 256], strides = [1, 1]} : vector<4x256xf32> to vector<1x256xf32>
    %269 = vector.extract_strided_slice %239 {offsets = [3, 0], sizes = [1, 256], strides = [1, 1]} : vector<4x256xf32> to vector<1x256xf32>
    %270 = arith.addf %268, %269 : vector<1x256xf32>
    %c0_139 = arith.constant 0 : index
    %271 = memref.load %arg4[%c0_139] : memref<1xf32, #tpu.memory_space<smem>>
    %272 = vector.broadcast %271 : f32 to vector<1x256xf32>
    %273 = arith.addf %270, %272 : vector<1x256xf32>
    %274 = math.absf %273 : vector<1x256xf32>
    %cst_140 = arith.constant 0.000000e+00 : f32
    %275 = vector.broadcast %cst_140 : f32 to vector<1x256xf32>
    %276 = arith.subf %275, %274 : vector<1x256xf32>
    %277 = math.exp %276 : vector<1x256xf32>
    %cst_141 = arith.constant 1.000000e+00 : f32
    %278 = vector.broadcast %cst_141 : f32 to vector<1x256xf32>
    %279 = arith.addf %278, %277 : vector<1x256xf32>
    %cst_142 = arith.constant 1.000000e+00 : f32
    %280 = vector.broadcast %cst_142 : f32 to vector<1x256xf32>
    %281 = arith.divf %280, %279 : vector<1x256xf32>
    %cst_143 = arith.constant 0.000000e+00 : f32
    %282 = vector.broadcast %cst_143 : f32 to vector<1x256xf32>
    %283 = arith.cmpf oge, %273, %282 : vector<1x256xf32>
    %284 = arith.mulf %277, %281 : vector<1x256xf32>
    %285 = arith.select %283, %281, %284 : vector<1x256xi1>, vector<1x256xf32>
    %c1_144 = arith.constant 1 : index
    %c0_145 = arith.constant 0 : index
    %c0_146 = arith.constant 0 : index
    %286 = vector.load %arg1[%c1_144, %c0_145, %c0_146] : memref<2x8x256xf32, #tpu.memory_space<vmem>>, vector<1x8x256xf32>
    %287 = vector.shape_cast %286 : vector<1x8x256xf32> to vector<8x256xf32>
    %288 = vector.extract_strided_slice %45 {offsets = [8, 0], sizes = [8, 1], strides = [1, 1]} : vector<16x1xf32> to vector<8x1xf32>
    %289 = vector.broadcast %288 : vector<8x1xf32> to vector<8x256xf32>
    %290 = arith.mulf %287, %289 : vector<8x256xf32>
    %291 = vector.broadcast %285 : vector<1x256xf32> to vector<8x256xf32>
    %292 = arith.mulf %290, %291 : vector<8x256xf32>
    %c1_147 = arith.constant 1 : index
    %c0_148 = arith.constant 0 : index
    %c0_149 = arith.constant 0 : index
    %293 = vector.load %arg9[%c1_147, %c0_148, %c0_149] : memref<2x8x256xf32, #tpu.memory_space<vmem>>, vector<1x8x256xf32>
    %294 = vector.shape_cast %293 : vector<1x8x256xf32> to vector<8x256xf32>
    %295 = vector.shape_cast %292 : vector<8x256xf32> to vector<1x8x256xf32>
    tpu.vector_store %arg9[%c1_147, %c0_148, %c0_149], %295 {strides = array<i32>} : memref<2x8x256xf32, #tpu.memory_space<vmem>>, vector<1x8x256xf32>,
    return
  }
  func.func @transform_0(%arg0: i32) -> (i32, i32, i32) {
    %c0_i32 = arith.constant 0 : i32
    %c0_i32_0 = arith.constant 0 : i32
    %c0_i32_1 = arith.constant 0 : i32
    return %arg0, %c0_i32, %c0_i32_0 : i32, i32, i32
  }
  func.func @transform_1(%arg0: i32) -> i32 {
    %c0_i32 = arith.constant 0 : i32
    %c0_i32_0 = arith.constant 0 : i32
    return %c0_i32 : i32
  }
  func.func @transform_2(%arg0: i32) -> i32 {
    %c0_i32 = arith.constant 0 : i32
    %c0_i32_0 = arith.constant 0 : i32
    return %c0_i32 : i32
  }
  func.func @transform_3(%arg0: i32) -> i32 {
    %c0_i32 = arith.constant 0 : i32
    %c0_i32_0 = arith.constant 0 : i32
    return %c0_i32 : i32
  }
  func.func @transform_4(%arg0: i32) -> (i32, i32) {
    %c0_i32 = arith.constant 0 : i32
    %c0_i32_0 = arith.constant 0 : i32
    %c0_i32_1 = arith.constant 0 : i32
    return %c0_i32, %c0_i32_0 : i32, i32
  }
  func.func @transform_5(%arg0: i32) -> (i32, i32) {
    %c0_i32 = arith.constant 0 : i32
    %c0_i32_0 = arith.constant 0 : i32
    %c0_i32_1 = arith.constant 0 : i32
    return %c0_i32, %c0_i32_0 : i32, i32
  }
  func.func @transform_6(%arg0: i32) -> (i32, i32) {
    %c0_i32 = arith.constant 0 : i32
    %c0_i32_0 = arith.constant 0 : i32
    %c0_i32_1 = arith.constant 0 : i32
    return %c0_i32, %c0_i32_0 : i32, i32
  }
  func.func @transform_7(%arg0: i32) -> (i32, i32) {
    %c0_i32 = arith.constant 0 : i32
    %c0_i32_0 = arith.constant 0 : i32
    %c0_i32_1 = arith.constant 0 : i32
    return %c0_i32, %c0_i32_0 : i32, i32
  }
  func.func @transform_8(%arg0: i32) -> (i32, i32, i32) {
    %c0_i32 = arith.constant 0 : i32
    %c0_i32_0 = arith.constant 0 : i32
    %c0_i32_1 = arith.constant 0 : i32
    return %arg0, %c0_i32, %c0_i32_0 : i32, i32, i32
  }
}

</mosaic_0001>

<bundles_post_ra>
// kernel: tpu_custom_call.1
= control target key start
LH: loop header
LB: loop body
LE: loop exit
PB: predicated region body
PF: predicated region fallthrough
CT: control target
= control target key end

     0   :  { %14 = vsyncpa [#allocation7], 0  ;;  %s3078_s0 = inlined_call_operand.hbm [shape: f32[2,8,256], index: 0, kind: input, shape index: {}]   ;;  %s3079_s1 = inlined_call_operand.vmem [shape: f32[3], index: 1, kind: input, shape index: {}]   ;;  %s3080_s2 = inlined_call_operand.vmem [shape: f32[2], index: 2, kind: input, shape index: {}]   ;;  %s3081_s3 = inlined_call_operand.<no memory space> [shape: f32[1], index: 3, kind: input, shape index: {}]   ;;  %s3082_s4 = inlined_call_operand.vmem [shape: f32[16,18], index: 4, kind: input, shape index: {}]   ;;  %s3083_s5 = inlined_call_operand.hbm [shape: f32[4,9], index: 5, kind: input, shape index: {}]   ;;  %s3084_s6 = inlined_call_operand.vmem [shape: f32[2,256], index: 6, kind: input, shape index: {}]   ;;  %s3085_s7 = inlined_call_operand.vmem [shape: f32[16,2], index: 7, kind: input, shape index: {}]   ;;  %s3086_s8 = inlined_call_operand.hbm [shape: f32[2,8,256], index: 8, kind: output, shape index: {}]  }
   0x1   :  { %15 = vsyncpa [#allocation9], 0 }
   0x2   :  { %16 = vsyncpa [#allocation12], 0 }
   0x3   :  { %17 = vsyncpa [#allocation14], 0 }
   0x4   :  { %18 = vsyncpa [#allocation8], 0  ;;  %s23_s29 = sshll.u32 %s3078_s0, 4  ;;  %s1982_s30 = smov [#allocation6]   ;;  %s24_s29 = int_to_ptr.hbm [resolvable:$true] %s23_s29 }
   0x5   :  { %s25_s9 = sshll.u32 %s1982_s30, 4  ;;  %s37_s12 = sshll.u32 %s3079_s1, 4  ;;  %s26_s9 = int_to_ptr.vmem [resolvable:$true] %s25_s9  ;;  %s38_s12 = int_to_ptr.vmem [resolvable:$true] %s37_s12 }
   0x6   :  { %s1983_s13 = smov 256   ;;  %s1984_s14 = smov 16  }
   0x7   :  { %31 = dma.hbm_to_vmem [thread:$0]  %s24_s29, 512, %s26_s9, [#allocation7], %s1983_s13, %s1983_s13, %s1984_s14  }
   0x8   :  { %s1985_s15 = smov [#allocation10]   ;;  %s46_s0 = sshll.u32 %s3080_s2, 4  ;;  %s47_s0 = int_to_ptr.vmem [resolvable:$true] %s46_s0 }
   0x9   :  { %40 = dma.vmem_to_smem %s38_s12, 16, %s1985_s15, [#allocation9]  }
   0xa   :  { %s59_s20 = sshll.u32 %s3083_s5, 4  ;;  %s1986_s21 = smov [#allocation11]   ;;  %s60_s20 = int_to_ptr.hbm [resolvable:$true] %s59_s20 }
   0xb   :  { %49 = dma.vmem_to_smem %s47_s0, 16, %s1986_s21, [#allocation12]  }
   0xc   :  { %s1987_s1 = smov [#allocation13]  }
   0xd   :  { %s61_s22 = sshll.u32 %s1987_s1, 4  ;;  %s62_s22 = int_to_ptr.vmem [resolvable:$true] %s61_s22 }
   0xe   :  { %64 = dma.hbm_to_vmem [thread:$0]  %s60_s20, 64, %s62_s22, [#allocation14]  }
   0xf   :  { %1972 = dma.done.wait [#allocation7], 512  }
  0x10   :  { %1973 = vsyncadd [#allocation7], 4294966784 }
  0x11   :  { %1974 = dma.done.wait [#allocation9], 16  }
  0x12   :  { %1975 = vsyncadd [#allocation9], 4294967280 }
  0x13   :  { %1976 = dma.done.wait [#allocation12], 16  }
  0x14   :  { %1977 = vsyncadd [#allocation12], 4294967280 }
  0x15   :  { %1978 = dma.done.wait [#allocation14], 64  }
  0x16   :  { %1979 = vsyncadd [#allocation14], 4294967232 }
  0x17   :  { %85 = sfence }
  0x18   :  { %v2084_v0 = vld [vmem:[%s3085_s7] sm:$0xff]  ;;  %v2086_v1 = vld [vmem:[#allocation6] sm:$0xff]  ;;  %v2088_v2 = vld [vmem:[#allocation6 + $0x8] sm:$0xff]  ;;  %s1988_s5 = smov 127   ;;  %v3094_v4 = vmov 0   ;;  %v3093_v8 = vmov 1  }
  0x19   :  { %145 = vrot.lane.b32.xlu1 %v2084_v0, %s1988_s5  ;;  %v103_v3 = vadd.f32 %v2088_v2, %v2086_v1  ;;  %1807 = vset.pattern.permute.xlu2 %v3094_v4  ;;  %v2099_v5 = vld [vmem:[%s3082_s4] sm:$0xff]  ;;  %v2104_v7 = vld [vmem:[#allocation6 + $0x18] sm:$0xff]  ;;  %v1991_v12 = vmov 9   ;;  %s1992_s30 = smov 111   ;;  %v1993_v16 = vmov 10   ;;  %s1994_s12 = smov 113  }
  0x1a   :  { %1808 = vset.pattern.permute.xlu1 %v3094_v4  ;;  %250 = vperm.xlu2 %1807, %v2099_v5   ;;  %v2102_v6 = vld [vmem:[#allocation6 + $0x10] sm:$0xff]  ;;  %v2110_v9 = vld [vmem:[%s3085_s7 + $0x8] sm:$0xff]  ;;  %v3092_v19 = vmov 2   ;;  %v1996_v20 = vmov 11   ;;  %vm96_vm0 = vcmask 0   ;;  %v3088_v22 = vmov 0.0  }
  0x1b   :  { %104 = vadd.xlane.f32.xlu0 %v103_v3  ;;  %v106_v10 = vadd.f32 %v2104_v7, %v2102_v6  ;;  %v219_v11 = vld [vmem:[%s3084_s6] ss:$2 sm:$0x3]  ;;  %v2129_v14 = vld [vmem:[%s3082_s4 + $0x8] sm:$0xff]  ;;  %97 = vst.msk [vmem:[#allocation4] sm:$0x1] %vm96_vm0, %v3088_v22 }
  0x1c   :  { %1812 = vset.pattern.permute.xlu0 %v3093_v8  ;;  %v2120_v13 = vperm.slane %v219_v11, 1  ;;  %v2132_v15 = vperm.slane %v219_v11, 0  ;;  %v1765_v17 = vld [vmem:[%s3084_s6 + $0x1] ss:$2 sm:$0x3]  ;;  %v1998_v23 = vmov 256.0  }
  0x1d   :  { %v2141_v18 = vperm.slane %v1765_v17, 0  ;;  %v2151_v21 = vperm.slane %v1765_v17, 1  ;;  %98 = vst.msk [vmem:[#allocation4 + $0x11] sm:$0x1] %vm96_vm0, %v3088_v22  ;;  %1853 = vrcp.f32 %v1998_v23  ;;  %vm86_vm1 = vcmask 1048440   ;;  %s2001_s6 = smov 126  }
  0x1e   :  { %3118 = vst [vmem:[#allocation21_spill] sm:$0xff] %v2120_v13  ;;  %v3090_v31 = vmov 3   ;;  %vm118_vm3 = vcmask 7168   ;;  %v2000_v53 = vmov 12   ;;  %v2002_v61 = vmov 13   ;;  %s2003_s15 = smov 1  }
  0x1f   :  { %3119 = vst [vmem:[#allocation22_spill] sm:$0xff] %v2132_v15  ;;  %v3087_v17 = vmov 5   ;;  %s2006_s16 = smov 112   ;;  %s2008_s17 = smov 15   ;;  %vm89_vm4 = vcmask 138240   ;;  %vm322_vm15 = vcmask 1039360  }
  0x20   :  { %3120 = vst [vmem:[#allocation23_spill] sm:$0xff] %v2141_v18  ;;  %s2009_s0 = smov 110   ;;  %s121_s18 = sld [smem:[#allocation10]]  ;;  %vm394_vm0 = vcmask 924672  }
  0x21   :  { %147 = vrot.lane.b32.xlu1 %v2110_v9, %s1988_s5  ;;  %3121 = vst [vmem:[#allocation24_spill] sm:$0xff] %v2151_v21  ;;  %s1764_s19 = sld [smem:[#allocation10 + $0x2]]  ;;  %s2012_s21 = smov 96  }
  0x22   :  { %1809 = vset.pattern.permute.xlu2 %v1991_v12  ;;  %87 = vst.msk [vmem:[#allocation2] sm:$0xff] %vm86_vm1, %v3088_v22  ;;  %s1763_s20 = sld [smem:[#allocation10 + $0x1]]  ;;  %s2016_s1 = smov 17  }
  0x23   :  { %107 = vadd.xlane.f32.xlu0 %v106_v10  ;;  %271 = vperm.xlu2 %1809, %v2099_v5   ;;  %v1854_v24 = vpop.eup %1853  ;;  %88 = vst.msk [vmem:[#allocation2 + $0x20] sm:$0xff] %vm86_vm1, %v3088_v22  ;;  %s2019_s23 = smov 94   ;;  %s2890_s24 = sld [smem:[#allocation11]] }
  0x24   :  { %v110_v25 = vmul.f32 256.0, %v1854_v24  ;;  %vm114_vm2 = vweird.f32 %v1854_v24  ;;  %91 = vst.msk [vmem:[#allocation2 + $0x38] sm:$0xff] %vm89_vm4, %v3088_v22  ;;  %s2951_s25 = sld [smem:[#allocation11 + $0x1]] }
  0x25   :  { %90 = vst.msk [vmem:[#allocation2 + $0x18] sm:$0xff] %vm89_vm4, %v3088_v22 }
  0x26   :  { %v111_v26 = vsub.f32 1.0, %v110_v25 }
  0x28   :  { %v112_v28 = vmul.f32 %v1854_v24, %v111_v26 }
  0x29   :  { %233 = vrot.lane.b32.xlu1 %v2120_v13, %s1992_s30  ;;  %v222_v40 = vld [vmem:[#allocation2] sm:$0xff] }
  0x2a   :  { %v113_v29 = vadd.f32 %v1854_v24, %v112_v28  ;;  %v2198_v46 = vld [vmem:[#allocation2 + $0x20] sm:$0xff]  ;;  %v2007_v28 = vmov 14  }
  0x2b   :  { %1811 = vset.pattern.permute.xlu2 %v3093_v8  ;;  %v126_v8 = vstv %s121_s18 }
  0x2c   :  { %291 = vperm.xlu2 %1811, %v2099_v5   ;;  %v115_v32 = vsel %vm114_vm2, %v1854_v24, %v113_v29  ;;  %vm810_vm2 = vcmask 121856  }
  0x31   :  { %255 = vperm.xlu1 %1808, %v2129_v14  }
  0x34   :  { %1813 = vset.pattern.permute.xlu2 %v1993_v16 }
  0x35   :  { %340 = vperm.xlu2 %1813, %v2099_v5  }
  0x37   :  { %231 = vrot.lane.b32.xlu0 %v2132_v15, %s1992_s30 }
  0x39   :  { %1810 = vset.pattern.permute.xlu1 %v1991_v12 }
  0x3a   :  { %275 = vperm.xlu1 %1810, %v2129_v14  }
  0x3d   :  { %390 = vrot.lane.b32.xlu2 %v2141_v18, %s1994_s12 }
  0x3e   :  { %1816 = vset.pattern.permute.xlu2 %v3092_v19 }
  0x3f   :  { %295 = vperm.xlu0 %1812, %v2129_v14  }
  0x42   :  { %1815 = vset.pattern.permute.xlu1 %v3092_v19 }
  0x43   :  { %406 = vperm.xlu1 %1815, %v2099_v5  }
  0x45   :  { %410 = vperm.xlu2 %1816, %v2129_v14  }
  0x47   :  { %1814 = vset.pattern.permute.xlu0 %v1993_v16 }
  0x48   :  { %344 = vperm.xlu0 %1814, %v2129_v14  }
  0x4b   :  { %1818 = vset.pattern.permute.xlu1 %v1996_v20 }
  0x4c   :  { %459 = vperm.xlu1 %1818, %v2129_v14  }
  0x4d   :  { %1819 = vset.pattern.permute.xlu2 %v3090_v31 }
  0x4e   :  { %517 = vperm.xlu2 %1819, %v2099_v5  }
  0x50   :  { %392 = vrot.lane.b32.xlu0 %v2151_v21, %s1994_s12 }
  0x51   :  { %1817 = vset.pattern.permute.xlu0 %v1996_v20  ;;  %v3091_v20 = vmov 4  }
  0x54   :  { %504 = vrot.lane.b32.xlu1 %v2120_v13, %s1988_s5 }
  0x55   :  { %1826 = vset.pattern.permute.xlu1 %v2002_v61 }
  0x56   :  { %1821 = vset.pattern.permute.xlu2 %v2000_v53 }
  0x58   :  { %455 = vperm.xlu0 %1817, %v2099_v5  }
  0x60   :  { %502 = vrot.lane.b32.xlu0 %v2132_v15, %s1988_s5 }
  0x61   :  { %1820 = vset.pattern.permute.xlu0 %v3090_v31 }
  0x74   :  { %v2163_v27 = vpop.permute.xlu2 %250 }
  0x7d   :  { %v2173_v33 = vpop.permute.xlu2 %271 }
  0x86   :  { %v2182_v38 = vpop.permute.xlu2 %291 }
  0x87   :  { %v298_v41 = vmul.f32 %v2182_v38, %v222_v40 }
  0x89   :  { %310 = vrot.lane.b32.xlu1 %v298_v41, %s1988_s5 }
  0x8b   :  { %v2169_v30 = vpop.permute.xlu1 %145 }
  0x8e   :  { %v105_v34 = vpop.xlane.xlu0 %104 }
  0x8f   :  { %v2176_v35 = vmul.f32 %v115_v32, %v105_v34  ;;  %v2192_v43 = vpop.permute.xlu2 %340 }
  0x90   :  { %v347_v44 = vmul.f32 %v2192_v43, %v222_v40 }
  0x91   :  { %119 = vst.msk [vmem:[#allocation4 + $0x1] sm:$0xff] %vm118_vm3, %v2176_v35 }
  0x92   :  { %359 = vrot.lane.b32.xlu1 %v347_v44, %s1988_s5 }
  0x93   :  { %v2180_v36 = vpop.permute.xlu1 %147 }
  0x96   :  { %v108_v37 = vpop.xlane.xlu0 %107 }
  0x97   :  { %v2184_v39 = vmul.f32 %v115_v32, %v108_v37  ;;  %v2211_v51 = vpop.permute.xlu2 %390 }
  0x98   :  { %v399_v55 = vmul.f32 %v2211_v51, %v222_v40  ;;  %v402_v58 = vmul.f32 %v2211_v51, %v2198_v46  ;;  %v124_v4 = vld [vmem:[#allocation4] sm:$0xff] }
  0x99   :  { %120 = vst.msk [vmem:[#allocation4 + $0x9] sm:$0xff] %vm118_vm3, %v2184_v39 }
  0x9a   :  { %656 = vperm.xlu1 %1826, %v2129_v14  }
  0x9b   :  { %v2190_v42 = vpop.permute.xlu1 %233 }
  0x9f   :  { %v2225_v59 = vpop.permute.xlu2 %410 }
  0xa0   :  { %v416_v63 = vmul.f32 %v2225_v59, %v402_v58 }
  0xa2   :  { %695 = vrot.lane.b32.xlu1 %v2141_v18, %s2003_s15 }
  0xa3   :  { %v2195_v45 = vpop.permute.xlu1 %255  ;;  %1828 = vset.pattern.permute.xlu1 %v3087_v17 }
  0xa4   :  { %3122 = vst [vmem:[#allocation25_spill] sm:$0xff] %v2195_v45  ;;  %v139_v45 = vld [vmem:[#allocation4 + $0xa] sm:$0xff] }
  0xa8   :  { %v2262_v25 = vpop.permute.xlu2 %517 }
  0xa9   :  { %v2200_v47 = vpop.permute.xlu0 %231 }
  0xaa   :  { %v2203_v48 = vmul.f32 %v2200_v47, %v222_v40  ;;  %v2207_v49 = vmul.f32 %v2200_v47, %v2198_v46  ;;  %714 = vperm.xlu1 %1828, %v2129_v14  }
  0xac   :  { %3123 = vst [vmem:[#allocation26_spill] sm:$0xff] %v2207_v49  ;;  %v2209_v50 = vpop.permute.xlu1 %275 }
  0xad   :  { %3124 = vst [vmem:[#allocation27_spill] sm:$0xff] %v2209_v50 }
  0xb1   :  { %v2213_v52 = vpop.permute.xlu0 %295 }
  0xb2   :  { %v301_v54 = vmul.f32 %v2213_v52, %v2198_v46  ;;  %1830 = vset.pattern.permute.xlu1 %v2007_v28 }
  0xb4   :  { %316 = vrot.lane.b32.xlu2 %v301_v54, %s1988_s5 }
  0xb5   :  { %v2219_v56 = vpop.permute.xlu1 %406 }
  0xb6   :  { %v413_v57 = vmul.f32 %v2219_v56, %v399_v55 }
  0xb8   :  { %425 = vrot.lane.b32.xlu0 %v413_v57, %s2001_s6 }
  0xba   :  { %v2227_v60 = vpop.permute.xlu0 %344 }
  0xbb   :  { %v350_v62 = vmul.f32 %v2227_v60, %v2198_v46 }
  0xbd   :  { %365 = vrot.lane.b32.xlu2 %v350_v62, %s1988_s5 }
  0xbe   :  { %v2235_v3 = vpop.permute.xlu1 %459 }
  0xbf   :  { %v465_v11 = vmul.f32 %v2235_v3, %v402_v58 }
  0xc0   :  { %431 = vrot.lane.b32.xlu0 %v416_v63, %s2001_s6 }
  0xc2   :  { %v2237_v10 = vpop.permute.xlu0 %392 }
  0xc6   :  { %v2288_v54 = vpop.permute.xlu1 %504 }
  0xc8   :  { %480 = vrot.lane.b32.xlu0 %v465_v11, %s2001_s6 }
  0xca   :  { %v2243_v12 = vpop.permute.xlu0 %455 }
  0xcb   :  { %v462_v16 = vmul.f32 %v2243_v12, %v399_v55 }
  0xcd   :  { %474 = vrot.lane.b32.xlu2 %v462_v16, %s2001_s6 }
  0xd0   :  { %521 = vperm.xlu0 %1820, %v2129_v14  }
  0xd2   :  { %v2258_v23 = vpop.permute.xlu0 %502 }
  0xd3   :  { %v510_v24 = vmul.f32 %v2258_v23, %v222_v40  ;;  %v513_v55 = vmul.f32 %v2258_v23, %v2198_v46 }
  0xd5   :  { %566 = vperm.xlu2 %1821, %v2099_v5   ;;  %v524_v26 = vmul.f32 %v2262_v25, %v510_v24 }
  0xd7   :  { %536 = vrot.lane.b32.xlu1 %v524_v26, %s2006_s16 }
  0xd8   :  { %1822 = vset.pattern.permute.xlu0 %v2000_v53 }
  0xd9   :  { %570 = vperm.xlu0 %1822, %v2129_v14  }
  0xdd   :  { %1823 = vset.pattern.permute.xlu2 %v3091_v20 }
  0xde   :  { %614 = vperm.xlu2 %1823, %v2099_v5  }
  0xe1   :  { %1824 = vset.pattern.permute.xlu0 %v3091_v20 }
  0xe2   :  { %618 = vperm.xlu0 %1824, %v2129_v14  }
  0xe6   :  { %697 = vrot.lane.b32.xlu2 %v2151_v21, %s2003_s15 }
  0xea   :  { %1825 = vset.pattern.permute.xlu0 %v2002_v61 }
  0xeb   :  { %652 = vperm.xlu0 %1825, %v2099_v5  }
  0xf3   :  { %1827 = vset.pattern.permute.xlu0 %v3087_v17 }
  0xf4   :  { %710 = vperm.xlu0 %1827, %v2099_v5  }
  0xfb   :  { %v2302_v61 = vpop.permute.xlu1 %310 }
  0xfc   :  { %1829 = vset.pattern.permute.xlu0 %v2007_v28 }
  0xfd   :  { %759 = vperm.xlu0 %1829, %v2099_v5  }
 0x104   :  { %v2308_v11 = vpop.permute.xlu1 %359 }
 0x105   :  { %806 = vrot.lane.b32.xlu0 %v2132_v15, %s2008_s17 }
 0x10e   :  { %v2271_v29 = vpop.permute.xlu2 %316 }
 0x10f   :  { %3125 = vst [vmem:[#allocation28_spill] sm:$0xff] %v2271_v29 }
 0x117   :  { %v2273_v32 = vpop.permute.xlu2 %365 }
 0x118   :  { %3126 = vst [vmem:[#allocation29_spill] sm:$0xff] %v2273_v32 }
 0x127   :  { %v2275_v34 = vpop.permute.xlu2 %474 }
 0x128   :  { %3127 = vst [vmem:[#allocation30_spill] sm:$0xff] %v2275_v34  ;;  %v127_v34 = vmul.f32 %v126_v8, %v124_v4 }
 0x12a   :  { %v2277_v37 = vpop.permute.xlu0 %425  ;;  %v131_v18 = vmul.f32 %v2084_v0, %v127_v34 }
 0x12b   :  { %3128 = vst [vmem:[#allocation31_spill] sm:$0xff] %v2277_v37  ;;  %v125_v37 = vld [vmem:[#allocation4 + $0x8] sm:$0xff] }
 0x12c   :  { %v128_v50 = vmul.f32 %v126_v8, %v125_v37 }
 0x12e   :  { %v132_v49 = vmul.f32 %v2110_v9, %v128_v50 }
 0x12f   :  { %v2279_v40 = vpop.permute.xlu2 %566 }
 0x130   :  { %v573_v41 = vmul.f32 %v2279_v40, %v510_v24  ;;  %v2314_v24 = vpop.permute.xlu1 %656 }
 0x132   :  { %v2282_v44 = vpop.permute.xlu0 %431  ;;  %585 = vrot.lane.b32.xlu1 %v573_v41, %s2006_s16  ;;  %v2320_v41 = vld [vmem:[#allocation2 + $0x18] sm:$0xff] }
 0x133   :  { %3129 = vst [vmem:[#allocation32_spill] sm:$0xff] %v2282_v44 }
 0x138   :  { %v2312_v16 = vpop.permute.xlu2 %614 }
 0x13a   :  { %v2285_v53 = vpop.permute.xlu0 %480  ;;  %763 = vperm.xlu1 %1830, %v2129_v14  }
 0x13b   :  { %3130 = vst [vmem:[#allocation33_spill] sm:$0xff] %v2285_v53  ;;  %v140_v53 = vstv %s1764_s19 }
 0x13c   :  { %v142_v0 = vmul.f32 %v140_v53, %v139_v45 }
 0x140   :  { %v2318_v28 = vpop.permute.xlu2 %697 }
 0x142   :  { %v2296_v57 = vpop.permute.xlu0 %521  ;;  %808 = vrot.lane.b32.xlu1 %v2120_v13, %s2008_s17  ;;  %v138_v13 = vld [vmem:[#allocation4 + $0x2] sm:$0xff] }
 0x143   :  { %v527_v58 = vmul.f32 %v2296_v57, %v513_v55  ;;  %v141_v44 = vmul.f32 %v140_v53, %v138_v13  ;;  %v3107_v13 = vmov 6  }
 0x144   :  { %1832 = vset.pattern.permute.xlu0 %v3107_v13  ;;  %1831 = vset.pattern.permute.xlu2 %v3107_v13 }
 0x145   :  { %542 = vrot.lane.b32.xlu2 %v527_v58, %s2006_s16  ;;  %v2322_v58 = vpop.permute.xlu1 %695  ;;  %826 = vperm.xlu0 %1832, %v2129_v14  }
 0x14b   :  { %v2304_v62 = vpop.permute.xlu0 %570 }
 0x14c   :  { %v576_v63 = vmul.f32 %v2304_v62, %v513_v55  ;;  %v705_v55 = vmul.f32 %v2318_v28, %v2320_v41 }
 0x14d   :  { %v2334_v20 = vpop.permute.xlu1 %714 }
 0x14e   :  { %591 = vrot.lane.b32.xlu2 %v576_v63, %s2006_s16  ;;  %v2326_v63 = vld [vmem:[#allocation2 + $0x38] sm:$0xff] }
 0x14f   :  { %3131 = vst [vmem:[#allocation34_spill] sm:$0xff] %v2326_v63  ;;  %v708_v31 = vmul.f32 %v2318_v28, %v2326_v63 }
 0x151   :  { %v722_v19 = vmul.f32 %v2334_v20, %v708_v31 }
 0x154   :  { %v2310_v46 = vpop.permute.xlu0 %618 }
 0x15d   :  { %v2316_v26 = vpop.permute.xlu0 %652 }
 0x166   :  { %v2328_v17 = vpop.permute.xlu0 %710 }
 0x167   :  { %v719_v22 = vmul.f32 %v2328_v17, %v705_v55 }
 0x169   :  { %733 = vrot.lane.b32.xlu2 %v719_v22, %s2009_s0  ;;  %v133_v22 = vstv %s1763_s20 }
 0x16a   :  { %v134_v32 = vmul.f32 %v133_v22, %v2176_v35  ;;  %v135_v4 = vmul.f32 %v133_v22, %v2184_v39  ;;  %v2011_v22 = vmov 15  }
 0x16b   :  { %1835 = vset.pattern.permute.xlu0 %v2011_v22 }
 0x16c   :  { %v136_v29 = vadd.f32 %v134_v32, %v131_v18  ;;  %v137_v35 = vadd.f32 %v135_v4, %v132_v49  ;;  %v152_v18 = vmul.f32 %v2180_v36, %v142_v0 }
 0x16e   :  { %v154_v32 = vadd.f32 %v152_v18, %v137_v35 }
 0x16f   :  { %v2338_v15 = vpop.permute.xlu0 %759 }
 0x170   :  { %v768_v63 = vmul.f32 %v2338_v15, %v705_v55  ;;  %v156_v50 = vand.u32 2147483647, %v154_v32  ;;  %vm196_vm14 = vcmp.ge.f32.partialorder %v154_v32, 0.0 }
 0x171   :  { %739 = vrot.lane.b32.xlu2 %v722_v19, %s2009_s0  ;;  %v151_v19 = vmul.f32 %v2169_v30, %v141_v44  ;;  %v2354_v44 = vpop.permute.xlu1 %536 }
 0x173   :  { %v2346_v21 = vadd.f32 %v151_v19, %v136_v29  ;;  %v158_v29 = vsub.f32 0.0, %v156_v50 }
 0x175   :  { %v155_v8 = vand.u32 2147483647, %v2346_v21  ;;  %v161_v39 = vmul.f32 1.442695, %v158_v29  ;;  %vm195_vm12 = vcmp.ge.f32.partialorder %v2346_v21, 0.0 }
 0x177   :  { %v157_v30 = vsub.f32 0.0, %v155_v8 }
 0x179   :  { %782 = vrot.lane.b32.xlu2 %v768_v63, %s2009_s0  ;;  %v159_v9 = vmul.f32 1.442695, %v157_v30 }
 0x17b   :  { %1855 = vpow2.f32 %v159_v9 }
 0x17c   :  { %1857 = vpow2.f32 %v161_v39 }
 0x181   :  { %v1856_v34 = vpop.eup %1855 }
 0x182   :  { %v163_v37 = vadd.f32 1.0, %v1856_v34  ;;  %v1858_v45 = vpop.eup %1857 }
 0x183   :  { %v164_v53 = vadd.f32 1.0, %v1858_v45 }
 0x184   :  { %1859 = vrcp.f32 %v163_v37  ;;  %v176_v9 = vand.u32 2147483648, %v163_v37  ;;  %vm170_vm6 = vweird.f32 %v163_v37  ;;  %v174_v50 = vand.u32 2147483647, %v163_v37 }
 0x185   :  { %1861 = vrcp.f32 %v164_v53  ;;  %vm185_vm10 = vweird.f32 %v164_v53 }
 0x186   :  { %vm175_vm8 = vcmp.eq.f32.partialorder %v174_v50, 8.507059e+37 }
 0x18a   :  { %v1860_v49 = vpop.eup %1859 }
 0x18b   :  { %v166_v36 = vmul.f32 %v1860_v49, %v163_v37  ;;  %v1862_v19 = vpop.eup %1861  ;;  %vm171_vm5 = vweird.f32 %v1860_v49  ;;  %v3133_v37 = vmov 0  }
 0x18c   :  { %v181_v8 = vmul.f32 %v1862_v19, %v164_v53  ;;  %vm172_vm7 = vmor %vm170_vm6, %vm171_vm5  ;;  %vm186_vm9 = vweird.f32 %v1862_v19  ;;  %vm235_vm5 = vcmask 908288   ;;  %vm437_vm6 = vcmask 1031168  }
 0x18d   :  { %v167_v63 = vsub.f32 1.0, %v166_v36  ;;  %v177_v36 = vor.u32 1.1754944e-38, %v176_v9  ;;  %vm187_vm11 = vmor %vm185_vm10, %vm186_vm9  ;;  %vm853_vm9 = vcmask 785408   ;;  %vm950_vm10 = vcmask 777216  }
 0x18e   :  { %v182_v30 = vsub.f32 1.0, %v181_v8 }
 0x18f   :  { %v168_v35 = vmul.f32 %v1860_v49, %v167_v63 }
 0x190   :  { %v183_v39 = vmul.f32 %v1862_v19, %v182_v30 }
 0x191   :  { %v169_v18 = vadd.f32 %v1860_v49, %v168_v35 }
 0x193   :  { %v173_v29 = vsel %vm172_vm7, %v1860_v49, %v169_v18  ;;  %vm548_vm7 = vcmask 916480  }
 0x194   :  { %v178_v13 = vsel %vm175_vm8, %v177_v36, %v173_v29  ;;  %vm741_vm8 = vcmask 900096  }
 0x195   :  { %v197_v63 = vmul.f32 %v1856_v34, %v178_v13 }
 0x197   :  { %v199_v49 = vsel %vm195_vm12, %v178_v13, %v197_v63  ;;  %vm1161_vm12 = vcmask 1041408  }
 0x19f   :  { %v2366_v34 = vpop.permute.xlu2 %542 }
 0x1a4   :  { %v2356_v55 = vpop.permute.xlu1 %585 }
 0x1a5   :  { %3132 = vst [vmem:[#allocation35_spill] sm:$0xff] %v2356_v55  ;;  %v184_v55 = vadd.f32 %v1862_v19, %v183_v39 }
 0x1a7   :  { %v188_v35 = vsel %vm187_vm11, %v1862_v19, %v184_v55  ;;  %vm1061_vm11 = vcmask 769024  }
 0x1ac   :  { %v2358_v4 = vpop.permute.xlu1 %763 }
 0x1ad   :  { %v771_v0 = vmul.f32 %v2358_v4, %v708_v31  ;;  %v191_v31 = vand.u32 2147483648, %v164_v53 }
 0x1af   :  { %788 = vrot.lane.b32.xlu2 %v771_v0, %s2009_s0  ;;  %v189_v0 = vand.u32 2147483647, %v164_v53  ;;  %v192_v8 = vor.u32 1.1754944e-38, %v191_v31  ;;  %v2368_v53 = vpop.permute.xlu2 %591 }
 0x1b1   :  { %vm190_vm13 = vcmp.eq.f32.partialorder %v189_v0, 8.507059e+37 }
 0x1b2   :  { %v193_v18 = vsel %vm190_vm13, %v192_v8, %v188_v35  ;;  %vm1303_vm13 = vcmask 1043456  }
 0x1b3   :  { %v198_v30 = vmul.f32 %v1858_v45, %v193_v18 }
 0x1b4   :  { %v2378_v50 = vpop.permute.xlu1 %808 }
 0x1b5   :  { %v200_v9 = vsel %vm196_vm14, %v193_v18, %v198_v30  ;;  %v2382_v32 = vmul.f32 %v2378_v50, %v2320_v41 }
 0x1b7   :  { %822 = vperm.xlu2 %1831, %v2099_v5  }
 0x1bf   :  { %1833 = vset.pattern.permute.xlu2 %v3133_v37 }
 0x1c0   :  { %203 = vperm.xlu2 %1833, %v199_v49  }
 0x1c3   :  { %v2370_v55 = vpop.permute.xlu2 %733 }
 0x1c8   :  { %208 = vperm.xlu2 %1833, %v200_v9  }
 0x1cb   :  { %v2372_v21 = vpop.permute.xlu2 %739 }
 0x1d0   :  { %1834 = vset.pattern.permute.xlu2 %v2011_v22 }
 0x1d1   :  { %871 = vperm.xlu2 %1834, %v2099_v5  }
 0x1d3   :  { %v2374_v19 = vpop.permute.xlu2 %782 }
 0x209   :  { %v2376_v13 = vpop.permute.xlu2 %788 }
 0x211   :  { %v2384_v45 = vpop.permute.xlu2 %822 }
 0x212   :  { %v831_v22 = vmul.f32 %v2384_v45, %v2382_v32 }
 0x214   :  { %845 = vrot.lane.b32.xlu1 %v831_v22, %s2012_s21 }
 0x21a   :  { %v2389_v29 = vpop.permute.xlu2 %203 }
 0x21b   :  { %3134 = vst [vmem:[#allocation36_spill] sm:$0xff] %v2389_v29  ;;  %v2393_v39 = vmul.f32 %v2389_v29, %v2086_v1  ;;  %v2397_v36 = vmul.f32 %v2389_v29, %v2088_v2 }
 0x21d   :  { %v299_v31 = vmul.f32 %v2182_v38, %v2393_v39  ;;  %v300_v63 = vmul.f32 %v2182_v38, %v2397_v36  ;;  %v348_v35 = vmul.f32 %v2192_v43, %v2393_v39  ;;  %v349_v49 = vmul.f32 %v2192_v43, %v2397_v36 }
 0x21e   :  { %v506_v43 = vsel %vm322_vm15, %v2258_v23, %v2288_v54  ;;  %v659_v22 = vmul.f32 %v2316_v26, %v2393_v39 }
 0x21f   :  { %312 = vrot.lane.b32.xlu2 %v299_v31, %s1988_s5  ;;  %314 = vrot.lane.b32.xlu1 %v300_v63, %s1988_s5 }
 0x222   :  { %v2405_v0 = vpop.permute.xlu2 %208 }
 0x223   :  { %3135 = vst [vmem:[#allocation37_spill] sm:$0xff] %v2405_v0  ;;  %v2409_v1 = vmul.f32 %v2405_v0, %v2102_v6  ;;  %v2413_v2 = vmul.f32 %v2405_v0, %v2104_v7  ;;  %v622_v6 = vmul.f32 %v2312_v16, %v2397_v36 }
 0x225   :  { %3136 = vst [vmem:[#allocation38_spill] sm:$0xff] %v2413_v2  ;;  %v302_v38 = vmul.f32 %v2213_v52, %v2409_v1  ;;  %v303_v8 = vmul.f32 %v2213_v52, %v2413_v2  ;;  %v351_v7 = vmul.f32 %v2227_v60, %v2409_v1  ;;  %v624_v52 = vmul.f32 %v2310_v46, %v2413_v2 }
 0x226   :  { %v662_v18 = vmul.f32 %v2314_v24, %v2413_v2  ;;  %v352_v30 = vmul.f32 %v2227_v60, %v2413_v2  ;;  %v514_v9 = vmul.f32 %v506_v43, %v2409_v1  ;;  %v621_v60 = vmul.f32 %v2312_v16, %v2393_v39 }
 0x227   :  { %361 = vrot.lane.b32.xlu2 %v348_v35, %s1988_s5  ;;  %318 = vrot.lane.b32.xlu0 %v302_v38, %s1988_s5  ;;  %v661_v23 = vmul.f32 %v2314_v24, %v2409_v1  ;;  %v623_v35 = vmul.f32 %v2310_v46, %v2409_v1  ;;  %v401_v16 = vmul.f32 %v2237_v10, %v2397_v36 }
 0x228   :  { %320 = vrot.lane.b32.xlu1 %v303_v8, %s1988_s5  ;;  %v528_v31 = vmul.f32 %v2296_v57, %v514_v9  ;;  %v577_v63 = vmul.f32 %v2304_v62, %v514_v9  ;;  %v706_v38 = vmul.f32 %v2322_v58, %v2409_v1  ;;  %v660_v46 = vmul.f32 %v2316_v26, %v2397_v36 }
 0x229   :  { %v415_v8 = vmul.f32 %v2219_v56, %v401_v16 }
 0x22a   :  { %v720_v24 = vmul.f32 %v2334_v20, %v706_v38 }
 0x22f   :  { %631 = vrot.lane.b32.xlu2 %v622_v6, %s1992_s30  ;;  %367 = vrot.lane.b32.xlu0 %v351_v7, %s1988_s5  ;;  %v395_v6 = vsel %vm394_vm0, %v2211_v51, %v2237_v10  ;;  %v404_v7 = vmul.f32 %v2237_v10, %v2413_v2  ;;  %v464_v51 = vmul.f32 %v2243_v12, %v401_v16 }
 0x230   :  { %363 = vrot.lane.b32.xlu1 %v349_v49, %s1988_s5  ;;  %v400_v49 = vmul.f32 %v395_v6, %v2393_v39 }
 0x232   :  { %v414_v26 = vmul.f32 %v2219_v56, %v400_v49  ;;  %v467_v56 = vmul.f32 %v2235_v3, %v404_v7  ;;  %v463_v9 = vmul.f32 %v2243_v12, %v400_v49  ;;  %v2014_v12 = vmov 17  }
 0x237   :  { %635 = vrot.lane.b32.xlu2 %v624_v52, %s1992_s30  ;;  %673 = vrot.lane.b32.xlu0 %v662_v18, %s1992_s30  ;;  %v418_v52 = vmul.f32 %v2225_v59, %v404_v7  ;;  %v769_v18 = vmul.f32 %v2358_v4, %v706_v38 }
 0x238   :  { %369 = vrot.lane.b32.xlu1 %v352_v30, %s1988_s5  ;;  %v403_v30 = vmul.f32 %v395_v6, %v2409_v1  ;;  %v703_v6 = vmul.f32 %v2322_v58, %v2393_v39 }
 0x23a   :  { %v417_v10 = vmul.f32 %v2225_v59, %v403_v30  ;;  %v511_v59 = vmul.f32 %v506_v43, %v2393_v39  ;;  %v2508_v43 = vpop.permute.xlu0 %806 }
 0x23c   :  { %v574_v16 = vmul.f32 %v2279_v40, %v511_v59 }
 0x23f   :  { %667 = vrot.lane.b32.xlu2 %v659_v22, %s1992_s30  ;;  %544 = vrot.lane.b32.xlu0 %v528_v31, %s2006_s16  ;;  %v3111_v22 = vmov 16   ;;  %v525_v31 = vmul.f32 %v2262_v25, %v511_v59 }
 0x240   :  { %629 = vrot.lane.b32.xlu1 %v621_v60, %s1992_s30  ;;  %v466_v60 = vmul.f32 %v2235_v3, %v403_v30  ;;  %v2513_v3 = vsel %vm810_vm2, %v2508_v43, %v2378_v50 }
 0x247   :  { %671 = vrot.lane.b32.xlu2 %v661_v23, %s1992_s30  ;;  %593 = vrot.lane.b32.xlu0 %v577_v63, %s2006_s16  ;;  %v2503_v23 = vpop.permute.xlu2 %871  ;;  %v512_v63 = vmul.f32 %v2288_v54, %v2397_v36 }
 0x248   :  { %633 = vrot.lane.b32.xlu1 %v623_v35, %s1992_s30  ;;  %v816_v35 = vmul.f32 %v2513_v3, %v2397_v36 }
 0x249   :  { %v526_v38 = vmul.f32 %v2262_v25, %v512_v63  ;;  %v515_v25 = vmul.f32 %v2288_v54, %v2413_v2  ;;  %v278_v54 = vmul.f32 %v2173_v33, %v2203_v48 }
 0x24b   :  { %v578_v59 = vmul.f32 %v2304_v62, %v515_v25 }
 0x24f   :  { %429 = vrot.lane.b32.xlu2 %v415_v8, %s2001_s6  ;;  %735 = vrot.lane.b32.xlu0 %v720_v24, %s2009_s0  ;;  %v879_v8 = vmul.f32 %v2503_v23, %v816_v35 }
 0x250   :  { %669 = vrot.lane.b32.xlu1 %v660_v46, %s1992_s30  ;;  %v258_v46 = vmul.f32 %v2163_v27, %v2203_v48  ;;  %v236_v48 = vsel %vm235_vm5, %v2200_v47, %v2190_v42 }
 0x257   :  { %435 = vrot.lane.b32.xlu2 %v418_v52, %s2001_s6  ;;  %784 = vrot.lane.b32.xlu0 %v769_v18, %s2009_s0  ;;  %v717_v52 = vmul.f32 %v2328_v17, %v703_v6  ;;  %v3108_v18 = vmov 7  }
 0x258   :  { %427 = vrot.lane.b32.xlu1 %v414_v26, %s2001_s6  ;;  %1837 = vset.pattern.permute.xlu2 %v3108_v18  ;;  %v529_v26 = vmul.f32 %v2296_v57, %v515_v25 }
 0x259   :  { %1836 = vset.pattern.permute.xlu1 %v3108_v18 }
 0x25f   :  { %478 = vrot.lane.b32.xlu2 %v464_v51, %s2001_s6  ;;  %875 = vperm.xlu0 %1835, %v2129_v14   ;;  %v766_v51 = vmul.f32 %v2338_v15, %v703_v6 }
 0x260   :  { %433 = vrot.lane.b32.xlu1 %v417_v10, %s2001_s6  ;;  %v575_v10 = vmul.f32 %v2279_v40, %v512_v63  ;;  %v2561_v40 = vpop.permute.xlu0 %826 }
 0x267   :  { %484 = vrot.lane.b32.xlu2 %v467_v56, %s2001_s6  ;;  %1838 = vset.pattern.permute.xlu0 %v3111_v22 }
 0x268   :  { %476 = vrot.lane.b32.xlu1 %v463_v9, %s2001_s6  ;;  %968 = vperm.xlu0 %1838, %v2099_v5   ;;  %v241_v9 = vmul.f32 %v236_v48, %v2393_v39 }
 0x26a   :  { %v259_v47 = vmul.f32 %v2163_v27, %v241_v9 }
 0x26f   :  { %538 = vrot.lane.b32.xlu2 %v525_v31, %s2006_s16  ;;  %v699_v31 = vsel %vm118_vm3, %v2322_v58, %v2318_v28  ;;  %v3138_v28 = vld [vmem:[#allocation24_spill] sm:$0xff]  ;;  %v3139_v58 = vld [vmem:[#allocation26_spill] sm:$0xff] }
 0x270   :  { %482 = vrot.lane.b32.xlu1 %v466_v60, %s2001_s6  ;;  %1843 = vset.pattern.permute.xlu0 %v2014_v12  ;;  %v704_v62 = vmul.f32 %v699_v31, %v2397_v36 }
 0x271   :  { %1083 = vperm.xlu0 %1843, %v2129_v14  }
 0x277   :  { %587 = vrot.lane.b32.xlu2 %v574_v16, %s2006_s16 }
 0x278   :  { %540 = vrot.lane.b32.xlu1 %v526_v38, %s2006_s16  ;;  %v718_v38 = vmul.f32 %v2328_v17, %v704_v62 }
 0x279   :  { %v313_v24 = vpop.permute.xlu2 %312  ;;  %892 = vrot.lane.b32.xlu0 %v879_v8, %s2012_s21  ;;  %v244_v8 = vmul.f32 %v236_v48, %v2409_v1 }
 0x27a   :  { %v323_v7 = vsel %vm322_vm15, %v2302_v61, %v313_v24  ;;  %1844 = vset.pattern.permute.xlu0 %v3133_v37 }
 0x27b   :  { %v2532_v49 = vadd.f32 %v323_v7, %v258_v46  ;;  %v3140_v46 = vld [vmem:[#allocation25_spill] sm:$0xff] }
 0x27c   :  { %v261_v6 = vmul.f32 %v3140_v46, %v3139_v58 }
 0x27f   :  { %729 = vrot.lane.b32.xlu2 %v717_v52, %s2009_s0 }
 0x280   :  { %546 = vrot.lane.b32.xlu1 %v529_v26, %s2006_s16  ;;  %v262_v26 = vmul.f32 %v3140_v46, %v244_v8 }
 0x281   :  { %v362_v61 = vpop.permute.xlu2 %361 }
 0x282   :  { %v371_v37 = vsel %vm322_vm15, %v2308_v11, %v362_v61  ;;  %v830_v11 = vmul.f32 %v2384_v45, %v816_v35 }
 0x283   :  { %v2544_v30 = vadd.f32 %v371_v37, %v278_v54  ;;  %v707_v54 = vmul.f32 %v699_v31, %v2413_v2  ;;  %v3143_v31 = vld [vmem:[#allocation29_spill] sm:$0xff] }
 0x285   :  { %v721_v48 = vmul.f32 %v2334_v20, %v707_v54 }
 0x286   :  { %v2550_v57 = vpop.permute.xlu1 %845 }
 0x287   :  { %778 = vrot.lane.b32.xlu2 %v766_v51, %s2009_s0  ;;  %3137 = vst [vmem:[#allocation39_spill] sm:$0xff] %v2550_v57 }
 0x288   :  { %589 = vrot.lane.b32.xlu1 %v575_v10, %s2006_s16 }
 0x289   :  { %v2552_v56 = vpop.permute.xlu2 %631 }
 0x28f   :  { %843 = vrot.lane.b32.xlu2 %v830_v11, %s2012_s21  ;;  %v3142_v11 = vld [vmem:[#allocation27_spill] sm:$0xff] }
 0x290   :  { %595 = vrot.lane.b32.xlu1 %v578_v59, %s2006_s16  ;;  %v281_v59 = vmul.f32 %v3142_v11, %v3139_v58 }
 0x291   :  { %v2567_v60 = vpop.permute.xlu2 %635  ;;  %v2570_v63 = vpop.permute.xlu1 %314 }
 0x292   :  { %v324_v35 = vsel %vm322_vm15, %v313_v24, %v2570_v63  ;;  %v3141_v24 = vld [vmem:[#allocation28_spill] sm:$0xff] }
 0x293   :  { %v2575_v16 = vadd.f32 %v324_v35, %v259_v47 }
 0x297   :  { %1017 = vrot.lane.b32.xlu2 %v3138_v28, %s2016_s1  ;;  %v818_v28 = vmul.f32 %v2508_v43, %v2409_v1 }
 0x298   :  { %731 = vrot.lane.b32.xlu1 %v718_v38, %s2009_s0 }
 0x299   :  { %v319_v7 = vpop.permute.xlu0 %318  ;;  %v2584_v25 = vpop.permute.xlu2 %667 }
 0x29a   :  { %v325_v52 = vsel %vm322_vm15, %v3141_v24, %v319_v7  ;;  %v2589_v17 = vpop.permute.xlu1 %320 }
 0x29b   :  { %v2592_v37 = vadd.f32 %v325_v52, %v261_v6  ;;  %v326_v51 = vsel %vm322_vm15, %v319_v7, %v2589_v17  ;;  %v279_v6 = vmul.f32 %v2173_v33, %v241_v9  ;;  %v282_v9 = vmul.f32 %v3142_v11, %v244_v8 }
 0x29c   :  { %v2596_v10 = vadd.f32 %v326_v51, %v262_v26  ;;  %v767_v26 = vmul.f32 %v2338_v15, %v704_v62  ;;  %v3109_v51 = vmov 8   ;;  %v770_v15 = vmul.f32 %v2358_v4, %v707_v54 }
 0x29d   :  { %v815_v8 = vmul.f32 %v2508_v43, %v2393_v39  ;;  %v819_v4 = vmul.f32 %v2513_v3, %v2413_v2 }
 0x29f   :  { %923 = vperm.xlu2 %1837, %v2129_v14   ;;  %v829_v54 = vmul.f32 %v2384_v45, %v815_v8 }
 0x2a0   :  { %737 = vrot.lane.b32.xlu1 %v721_v48, %s2009_s0 }
 0x2a1   :  { %v368_v47 = vpop.permute.xlu0 %367  ;;  %v2603_v35 = vpop.permute.xlu2 %671 }
 0x2a2   :  { %v373_v38 = vsel %vm322_vm15, %v3143_v31, %v368_v47  ;;  %v364_v7 = vpop.permute.xlu1 %363 }
 0x2a3   :  { %v2608_v24 = vadd.f32 %v373_v38, %v281_v59  ;;  %v372_v20 = vsel %vm322_vm15, %v362_v61, %v364_v7 }
 0x2a4   :  { %v2611_v52 = vadd.f32 %v372_v20, %v279_v6  ;;  %v833_v20 = vmul.f32 %v2561_v40, %v819_v4 }
 0x2a7   :  { %1840 = vset.pattern.permute.xlu2 %v3109_v51 }
 0x2a8   :  { %780 = vrot.lane.b32.xlu1 %v767_v26, %s2009_s0  ;;  %1030 = vperm.xlu2 %1840, %v2099_v5  }
 0x2a9   :  { %v2617_v58 = vpop.permute.xlu0 %673  ;;  %v2619_v48 = vpop.permute.xlu2 %429 }
 0x2aa   :  { %v370_v59 = vpop.permute.xlu1 %369 }
 0x2ab   :  { %v374_v61 = vsel %vm322_vm15, %v368_v47, %v370_v59  ;;  %v2637_v47 = vmul.f32 %v2190_v42, %v2397_v36 }
 0x2ac   :  { %v2623_v31 = vadd.f32 %v374_v61, %v282_v9 }
 0x2b0   :  { %786 = vrot.lane.b32.xlu1 %v770_v15, %s2009_s0  ;;  %1842 = vset.pattern.permute.xlu2 %v2014_v12  ;;  %v280_v12 = vmul.f32 %v2173_v33, %v2637_v47  ;;  %v2653_v15 = vmul.f32 %v2190_v42, %v2413_v2  ;;  %v3144_v33 = vmov 1  }
 0x2b1   :  { %v2628_v62 = vpop.permute.xlu0 %544  ;;  %v2630_v38 = vpop.permute.xlu2 %435  ;;  %1079 = vperm.xlu2 %1842, %v2099_v5  }
 0x2b2   :  { %v2639_v6 = vpop.permute.xlu1 %629  ;;  %v383_v26 = vadd.f32 %v364_v7, %v280_v12  ;;  %v283_v45 = vmul.f32 %v3142_v11, %v2653_v15  ;;  %v878_v7 = vmul.f32 %v2503_v23, %v815_v8 }
 0x2b4   :  { %v386_v12 = vadd.f32 %v370_v59, %v283_v45  ;;  %v3146_v45 = vld [vmem:[#allocation31_spill] sm:$0xff] }
 0x2b8   :  { %841 = vrot.lane.b32.xlu1 %v829_v54, %s2012_s21  ;;  %v3145_v54 = vld [vmem:[#allocation23_spill] sm:$0xff] }
 0x2b9   :  { %v2648_v9 = vpop.permute.xlu0 %593  ;;  %v479_v61 = vpop.permute.xlu2 %478  ;;  %849 = vrot.lane.b32.xlu2 %v833_v20, %s2012_s21 }
 0x2ba   :  { %v2655_v3 = vadd.f32 %v479_v61, %v383_v26  ;;  %v2657_v18 = vpop.permute.xlu1 %633  ;;  %1845 = vset.pattern.permute.xlu2 %v3144_v33 }
 0x2c0   :  { %1015 = vrot.lane.b32.xlu1 %v3145_v54, %s2016_s1  ;;  %v3147_v54 = vmov 16  }
 0x2c1   :  { %v2665_v20 = vpop.permute.xlu0 %735  ;;  %v485_v51 = vpop.permute.xlu2 %484  ;;  %890 = vrot.lane.b32.xlu2 %v878_v7, %s2012_s21 }
 0x2c2   :  { %v2668_v42 = vadd.f32 %v485_v51, %v386_v12  ;;  %v2670_v26 = vpop.permute.xlu1 %669 }
 0x2c3   :  { %v2675_v33 = vsel %vm235_vm5, %v2584_v25, %v2670_v26 }
 0x2c8   :  { %919 = vperm.xlu1 %1836, %v2099_v5  }
 0x2c9   :  { %v2678_v11 = vpop.permute.xlu0 %784  ;;  %v539_v59 = vpop.permute.xlu2 %538 }
 0x2ca   :  { %v428_v8 = vpop.permute.xlu1 %427  ;;  %v549_v29 = vsel %vm548_vm7, %v2354_v44, %v539_v59 }
 0x2cb   :  { %v438_v22 = vsel %vm437_vm6, %v3146_v45, %v428_v8  ;;  %v439_v7 = vsel %vm437_vm6, %v428_v8, %v2619_v48 }
 0x2cc   :  { %v448_v12 = vadd.f32 %v438_v22, %v2532_v49  ;;  %v449_v0 = vadd.f32 %v439_v7, %v2575_v16  ;;  %v3148_v16 = vld [vmem:[#allocation32_spill] sm:$0xff] }
 0x2ce   :  { %v559_v5 = vadd.f32 %v549_v29, %v448_v12  ;;  %v3149_v12 = vmov 8  }
 0x2d0   :  { %1839 = vset.pattern.permute.xlu1 %v3147_v54  ;;  %v645_v57 = vadd.f32 %v2639_v6, %v559_v5 }
 0x2d1   :  { %972 = vperm.xlu1 %1839, %v2129_v14   ;;  %v876_v45 = vpop.permute.xlu0 %875  ;;  %v2693_v8 = vpop.permute.xlu2 %587  ;;  %v551_v14 = vsel %vm548_vm7, %v2366_v34, %v2628_v62 }
 0x2d2   :  { %v881_v2 = vmul.f32 %v876_v45, %v818_v28  ;;  %v882_v22 = vmul.f32 %v876_v45, %v819_v4  ;;  %v434_v49 = vpop.permute.xlu1 %433 }
 0x2d3   :  { %v440_v7 = vsel %vm437_vm6, %v3148_v16, %v434_v49  ;;  %v441_v44 = vsel %vm437_vm6, %v434_v49, %v2630_v38 }
 0x2d4   :  { %v451_v29 = vadd.f32 %v440_v7, %v2592_v37  ;;  %v452_v43 = vadd.f32 %v441_v44, %v2596_v10  ;;  %898 = vrot.lane.b32.xlu0 %v882_v22, %s2012_s21  ;;  %896 = vrot.lane.b32.xlu2 %v881_v2, %s2012_s21  ;;  %v1871_v10 = vld [vmem:[%s3082_s4 + $0x8] sm:$0xff]  ;;  %v3150_v22 = vld [vmem:[#allocation30_spill] sm:$0xff]  ;;  %s2018_s4 = smov 95  }
 0x2d5   :  { %v3151_v44 = vld [vmem:[#allocation35_spill] sm:$0xff] }
 0x2d6   :  { %v562_v4 = vadd.f32 %v551_v14, %v451_v29 }
 0x2d8   :  { %v2707_v54 = vadd.f32 %v2657_v18, %v562_v4  ;;  %v832_v4 = vmul.f32 %v2561_v40, %v818_v28 }
 0x2d9   :  { %1841 = vset.pattern.permute.xlu1 %v3149_v12  ;;  %v2710_v5 = vpop.permute.xlu2 %729 }
 0x2da   :  { %v2713_v37 = vadd.f32 %v2710_v5, %v645_v57  ;;  %1034 = vperm.xlu1 %1841, %v1871_v10   ;;  %v477_v2 = vpop.permute.xlu1 %476  ;;  %v597_v57 = vsel %vm548_vm7, %v3151_v44, %v2693_v8 }
 0x2db   :  { %v486_v34 = vsel %vm437_vm6, %v3150_v22, %v477_v2  ;;  %v487_v49 = vsel %vm437_vm6, %v477_v2, %v479_v61  ;;  %v3153_v22 = vld [vmem:[#allocation34_spill] sm:$0xff] }
 0x2dc   :  { %v496_v16 = vadd.f32 %v486_v34, %v2544_v30  ;;  %v497_v7 = vadd.f32 %v487_v49, %v2611_v52  ;;  %v3152_v30 = vld [vmem:[#allocation33_spill] sm:$0xff]  ;;  %v820_v34 = vmul.f32 %v2378_v50, %v3153_v22  ;;  %v260_v49 = vmul.f32 %v2163_v27, %v2637_v47 }
 0x2de   :  { %v607_v29 = vadd.f32 %v597_v57, %v496_v16  ;;  %v599_v16 = vsel %vm548_vm7, %v2368_v53, %v2648_v9  ;;  %v335_v57 = vadd.f32 %v2570_v63, %v260_v49  ;;  %v263_v53 = vmul.f32 %v3140_v46, %v2653_v15 }
 0x2df   :  { %v637_v63 = vsel %vm235_vm5, %v2639_v6, %v2552_v56  ;;  %v638_v6 = vsel %vm235_vm5, %v2657_v18, %v2567_v60 }
 0x2e0   :  { %v683_v14 = vadd.f32 %v2584_v25, %v607_v29  ;;  %v834_v29 = vmul.f32 %v2561_v40, %v820_v34  ;;  %v450_v50 = vadd.f32 %v2619_v48, %v335_v57  ;;  %v880_v48 = vmul.f32 %v2503_v23, %v2382_v32 }
 0x2e1   :  { %v2728_v10 = vpop.permute.xlu2 %778 }
 0x2e2   :  { %v2731_v12 = vadd.f32 %v2728_v10, %v683_v14  ;;  %847 = vrot.lane.b32.xlu1 %v832_v4, %s2012_s21  ;;  %v483_v61 = vpop.permute.xlu1 %482  ;;  %v338_v14 = vadd.f32 %v2589_v17, %v263_v53 }
 0x2e3   :  { %v488_v52 = vsel %vm437_vm6, %v3152_v30, %v483_v61  ;;  %v489_v2 = vsel %vm437_vm6, %v483_v61, %v485_v51  ;;  %v883_v30 = vmul.f32 %v876_v45, %v820_v34  ;;  %v676_v34 = vsel %vm235_vm5, %v2603_v35, %v2617_v58 }
 0x2e4   :  { %v499_v25 = vadd.f32 %v488_v52, %v2608_v24  ;;  %v500_v28 = vadd.f32 %v489_v2, %v2623_v31  ;;  %v453_v4 = vadd.f32 %v2630_v38, %v338_v14  ;;  %vm92_vm6 = vcmask 1044344  }
 0x2e6   :  { %v610_v44 = vadd.f32 %v599_v16, %v499_v25 }
 0x2e8   :  { %v2749_v51 = vadd.f32 %v2603_v35, %v610_v44 }
 0x2ea   :  { %851 = vrot.lane.b32.xlu1 %v834_v29, %s2012_s21  ;;  %v541_v24 = vpop.permute.xlu1 %540 }
 0x2eb   :  { %v550_v31 = vsel %vm548_vm7, %v539_v59, %v541_v24  ;;  %v561_v27 = vadd.f32 %v541_v24, %v450_v50 }
 0x2ec   :  { %v560_v47 = vadd.f32 %v550_v31, %v449_v0  ;;  %v2808_v31 = vpop.permute.xlu2 %843 }
 0x2ee   :  { %v646_v40 = vadd.f32 %v637_v63, %v560_v47 }
 0x2f2   :  { %894 = vrot.lane.b32.xlu1 %v880_v48, %s2012_s21  ;;  %v547_v59 = vpop.permute.xlu1 %546 }
 0x2f3   :  { %v552_v0 = vsel %vm548_vm7, %v2628_v62, %v547_v59  ;;  %v564_v61 = vadd.f32 %v547_v59, %v453_v4 }
 0x2f4   :  { %v563_v46 = vadd.f32 %v552_v0, %v452_v43  ;;  %v1018_v63 = vpop.permute.xlu2 %1017 }
 0x2f6   :  { %v649_v15 = vadd.f32 %v638_v6, %v563_v46 }
 0x2fa   :  { %900 = vrot.lane.b32.xlu1 %v883_v30, %s2012_s21  ;;  %v590_v17 = vpop.permute.xlu1 %589  ;;  %v969_v30 = vpop.permute.xlu0 %968 }
 0x2fb   :  { %v598_v32 = vsel %vm548_vm7, %v2693_v8, %v590_v17  ;;  %v609_v23 = vadd.f32 %v590_v17, %v2655_v3  ;;  %v647_v3 = vadd.f32 %v2552_v56, %v561_v27  ;;  %v977_v17 = vmul.f32 %v969_v30, %v2320_v41 }
 0x2fc   :  { %v608_v38 = vadd.f32 %v598_v32, %v497_v7  ;;  %v924_v14 = vpop.permute.xlu2 %923 }
 0x2fd   :  { %v685_v52 = vadd.f32 %v2670_v26, %v609_v23  ;;  %v931_v0 = vmul.f32 %v924_v14, %v3153_v22  ;;  %v976_v23 = vmul.f32 %v969_v30, %v2397_v36 }
 0x2fe   :  { %v684_v62 = vadd.f32 %v2675_v33, %v608_v38  ;;  %v975_v38 = vmul.f32 %v969_v30, %v2393_v39 }
 0x302   :  { %v596_v43 = vpop.permute.xlu1 %595 }
 0x303   :  { %v600_v2 = vsel %vm548_vm7, %v2648_v9, %v596_v43  ;;  %v612_v18 = vadd.f32 %v596_v43, %v2668_v42  ;;  %v650_v42 = vadd.f32 %v2567_v60, %v564_v61  ;;  %v3154_v61 = vld [vmem:[#allocation38_spill] sm:$0xff] }
 0x304   :  { %v611_v45 = vadd.f32 %v600_v2, %v500_v28  ;;  %v930_v46 = vmul.f32 %v924_v14, %v3154_v61  ;;  %v755_v2 = vadd.f32 %v2665_v20, %v2707_v54 }
 0x305   :  { %v688_v29 = vadd.f32 %v2617_v58, %v612_v18 }
 0x306   :  { %v687_v25 = vadd.f32 %v676_v34, %v611_v45 }
 0x30a   :  { %v732_v8 = vpop.permute.xlu1 %731 }
 0x30b   :  { %v742_v26 = vsel %vm741_vm8, %v2710_v5, %v732_v8  ;;  %v743_v33 = vsel %vm741_vm8, %v732_v8, %v2370_v55 }
 0x30c   :  { %v753_v7 = vadd.f32 %v742_v26, %v646_v40  ;;  %v2786_v9 = vadd.f32 %v743_v33, %v647_v3 }
 0x312   :  { %v738_v28 = vpop.permute.xlu1 %737 }
 0x313   :  { %v744_v35 = vsel %vm741_vm8, %v2665_v20, %v738_v28  ;;  %v745_v49 = vsel %vm741_vm8, %v738_v28, %v2372_v21  ;;  %v1025_v20 = vmul.f32 %v1018_v63, %v2320_v41 }
 0x314   :  { %v756_v56 = vadd.f32 %v744_v35, %v649_v15  ;;  %v2793_v16 = vadd.f32 %v745_v49, %v650_v42  ;;  %v929_v15 = vmul.f32 %v924_v14, %v2409_v1  ;;  %v1028_v35 = vmul.f32 %v1018_v63, %v3153_v22 }
 0x31a   :  { %v781_v44 = vpop.permute.xlu1 %780 }
 0x31b   :  { %v790_v5 = vsel %vm741_vm8, %v2728_v10, %v781_v44  ;;  %v791_v55 = vsel %vm741_vm8, %v781_v44, %v2374_v19 }
 0x31c   :  { %v2799_v57 = vadd.f32 %v790_v5, %v684_v62  ;;  %v2801_v60 = vadd.f32 %v791_v55, %v685_v52 }
 0x322   :  { %v787_v50 = vpop.permute.xlu1 %786 }
 0x323   :  { %v792_v21 = vsel %vm741_vm8, %v2678_v11, %v787_v50  ;;  %v793_v24 = vsel %vm741_vm8, %v787_v50, %v2376_v13  ;;  %vm94_vm8 = vcmask 134144  }
 0x324   :  { %v2810_v27 = vadd.f32 %v792_v21, %v687_v25  ;;  %v2812_v10 = vadd.f32 %v793_v24, %v688_v29  ;;  %v1084_v29 = vpop.permute.xlu0 %1083 }
 0x325   :  { %v1091_v50 = vmul.f32 %v1084_v29, %v1028_v35 }
 0x32a   :  { %v842_v19 = vpop.permute.xlu1 %841 }
 0x32b   :  { %v854_v47 = vsel %vm853_vm9, %v842_v19, %v2808_v31  ;;  %v2817_v58 = vadd.f32 %v842_v19, %v2713_v37  ;;  %v1031_v37 = vpop.permute.xlu2 %1030 }
 0x32c   :  { %v2819_v53 = vadd.f32 %v854_v47, %v753_v7  ;;  %v1039_v7 = vmul.f32 %v1031_v37, %v1025_v20 }
 0x332   :  { %v1016_v40 = vpop.permute.xlu1 %1015 }
 0x333   :  { %v1080_v32 = vpop.permute.xlu2 %1079  ;;  %v1019_v45 = vsel %vm89_vm4, %v1016_v40, %v1018_v63  ;;  %v1023_v33 = vmul.f32 %v1016_v40, %v2393_v39 }
 0x334   :  { %v1024_v54 = vmul.f32 %v1019_v45, %v2397_v36  ;;  %v1027_v49 = vmul.f32 %v1019_v45, %v3154_v61 }
 0x335   :  { %v1037_v28 = vmul.f32 %v1031_v37, %v1023_v33  ;;  %v1086_v55 = vmul.f32 %v1080_v32, %v1023_v33 }
 0x336   :  { %v1038_v42 = vmul.f32 %v1031_v37, %v1024_v54  ;;  %v1090_v21 = vmul.f32 %v1084_v29, %v1027_v49 }
 0x33a   :  { %v920_v13 = vpop.permute.xlu1 %919 }
 0x33b   :  { %v926_v48 = vmul.f32 %v920_v13, %v2393_v39  ;;  %v927_v4 = vmul.f32 %v920_v13, %v2397_v36  ;;  %v928_v59 = vmul.f32 %v920_v13, %v2320_v41  ;;  %v2843_v18 = vpop.permute.xlu2 %849  ;;  %v1088_v39 = vmul.f32 %v1080_v32, %v1025_v20 }
 0x33c   :  { %v1087_v36 = vmul.f32 %v1080_v32, %v1024_v54 }
 0x33d   :  { %942 = vrot.lane.b32.xlu1 %v928_v59, %s2018_s4  ;;  %940 = vrot.lane.b32.xlu0 %v927_v4, %s2018_s4 }
 0x33e   :  { %938 = vrot.lane.b32.xlu2 %v926_v48, %s2018_s4 }
 0x343   :  { %v973_v6 = vpop.permute.xlu1 %972 }
 0x344   :  { %v980_v62 = vmul.f32 %v973_v6, %v3153_v22  ;;  %v979_v43 = vmul.f32 %v973_v6, %v3154_v61  ;;  %v978_v34 = vmul.f32 %v973_v6, %v2409_v1 }
 0x345   :  { %948 = vrot.lane.b32.xlu1 %v931_v0, %s2018_s4  ;;  %946 = vrot.lane.b32.xlu0 %v930_v46, %s2018_s4 }
 0x346   :  { %944 = vrot.lane.b32.xlu2 %v929_v15, %s2018_s4 }
 0x34c   :  { %v1035_v52 = vpop.permute.xlu1 %1034 }
 0x34d   :  { %991 = vrot.lane.b32.xlu1 %v977_v17, %s2018_s4  ;;  %989 = vrot.lane.b32.xlu0 %v976_v23, %s2018_s4  ;;  %v1041_v44 = vmul.f32 %v1035_v52, %v1027_v49  ;;  %v1042_v5 = vmul.f32 %v1035_v52, %v1028_v35 }
 0x34e   :  { %987 = vrot.lane.b32.xlu2 %v975_v38, %s2018_s4 }
 0x354   :  { %v848_v25 = vpop.permute.xlu1 %847 }
 0x355   :  { %v856_v3 = vsel %vm853_vm9, %v848_v25, %v2843_v18  ;;  %v867_v8 = vadd.f32 %v848_v25, %v755_v2  ;;  %997 = vrot.lane.b32.xlu1 %v980_v62, %s2018_s4  ;;  %995 = vrot.lane.b32.xlu0 %v979_v43, %s2018_s4 }
 0x356   :  { %v2851_v26 = vadd.f32 %v856_v3, %v756_v56  ;;  %993 = vrot.lane.b32.xlu2 %v978_v34, %s2018_s4  ;;  %v1026_v56 = vmul.f32 %v1016_v40, %v2409_v1  ;;  %v891_v1 = vpop.permute.xlu2 %890  ;;  %v893_v40 = vpop.permute.xlu0 %892 }
 0x358   :  { %v1040_v41 = vmul.f32 %v1035_v52, %v1026_v56  ;;  %v1089_v22 = vmul.f32 %v1084_v29, %v1026_v56 }
 0x35c   :  { %v852_v19 = vpop.permute.xlu1 %851 }
 0x35d   :  { %1053 = vrot.lane.b32.xlu1 %v1039_v7, %s2019_s23  ;;  %1051 = vrot.lane.b32.xlu0 %v1038_v42, %s2019_s23  ;;  %v902_v7 = vsel %vm853_vm9, %v891_v1, %v893_v40 }
 0x35e   :  { %1049 = vrot.lane.b32.xlu2 %v1037_v28, %s2019_s23  ;;  %v897_v24 = vpop.permute.xlu2 %896  ;;  %v899_v13 = vpop.permute.xlu0 %898  ;;  %v3155_v28 = vld [vmem:[#allocation39_spill] sm:$0xff] }
 0x35f   :  { %v855_v35 = vsel %vm853_vm9, %v2808_v31, %v3155_v28 }
 0x360   :  { %v866_v56 = vadd.f32 %v855_v35, %v2786_v9  ;;  %v857_v9 = vsel %vm853_vm9, %v2843_v18, %v852_v19 }
 0x361   :  { %v869_v18 = vadd.f32 %v857_v9, %v2793_v16 }
 0x364   :  { %v895_v63 = vpop.permute.xlu1 %894 }
 0x365   :  { %1059 = vrot.lane.b32.xlu1 %v1042_v5, %s2019_s23  ;;  %1057 = vrot.lane.b32.xlu0 %v1041_v44, %s2019_s23  ;;  %v913_v5 = vadd.f32 %v902_v7, %v2799_v57 }
 0x366   :  { %1055 = vrot.lane.b32.xlu2 %v1040_v41, %s2019_s23  ;;  %v803_v41 = vadd.f32 %v2678_v11, %v2749_v51 }
 0x36c   :  { %v901_v48 = vpop.permute.xlu1 %900 }
 0x36d   :  { %1102 = vrot.lane.b32.xlu1 %v1088_v39, %s2019_s23  ;;  %1100 = vrot.lane.b32.xlu0 %v1087_v36, %s2019_s23  ;;  %v904_v36 = vsel %vm853_vm9, %v897_v24, %v899_v13  ;;  %v905_v11 = vsel %vm853_vm9, %v899_v13, %v901_v48 }
 0x36e   :  { %1098 = vrot.lane.b32.xlu2 %v1086_v55, %s2019_s23  ;;  %v2912_v13 = vadd.f32 %v905_v11, %v2812_v10 }
 0x375   :  { %1108 = vrot.lane.b32.xlu1 %v1091_v50, %s2019_s23  ;;  %1106 = vrot.lane.b32.xlu0 %v1090_v21, %s2019_s23 }
 0x376   :  { %1104 = vrot.lane.b32.xlu2 %v1089_v22, %s2019_s23  ;;  %v903_v22 = vsel %vm853_vm9, %v893_v40, %v895_v63  ;;  %vm1363_vm9 = vcmask 130048  }
 0x398   :  { %v939_v47 = vpop.permute.xlu2 %938 }
 0x399   :  { %v961_v6 = vadd.f32 %v939_v47, %v2817_v58  ;;  %v912_v58 = vadd.f32 %v891_v1, %v2731_v12 }
 0x3a0   :  { %v945_v14 = vpop.permute.xlu2 %944 }
 0x3a1   :  { %v964_v32 = vadd.f32 %v945_v14, %v867_v8 }
 0x3a8   :  { %v2860_v4 = vpop.permute.xlu2 %987 }
 0x3a9   :  { %v1009_v20 = vadd.f32 %v2860_v4, %v912_v58 }
 0x3af   :  { %v943_v59 = vpop.permute.xlu1 %942  ;;  %v941_v37 = vpop.permute.xlu0 %940 }
 0x3b0   :  { %v2862_v0 = vpop.permute.xlu2 %993  ;;  %v951_v12 = vsel %vm950_vm10, %v939_v47, %v941_v37  ;;  %v952_v49 = vsel %vm950_vm10, %v941_v37, %v943_v59  ;;  %v2905_v37 = vadd.f32 %v904_v36, %v2810_v27 }
 0x3b1   :  { %v962_v31 = vadd.f32 %v951_v12, %v2819_v53  ;;  %v963_v55 = vadd.f32 %v952_v49, %v866_v56  ;;  %v915_v53 = vadd.f32 %v897_v24, %v803_v41 }
 0x3b3   :  { %v1012_v27 = vadd.f32 %v2862_v0, %v915_v53 }
 0x3b7   :  { %v949_v61 = vpop.permute.xlu1 %948  ;;  %v947_v46 = vpop.permute.xlu0 %946 }
 0x3b8   :  { %v1050_v15 = vpop.permute.xlu2 %1049  ;;  %v953_v19 = vsel %vm950_vm10, %v945_v14, %v947_v46  ;;  %v954_v48 = vsel %vm950_vm10, %v947_v46, %v949_v61 }
 0x3b9   :  { %v1072_v30 = vadd.f32 %v1050_v15, %v961_v6  ;;  %v965_v14 = vadd.f32 %v953_v19, %v2851_v26 }
 0x3bb   :  { %v1126_v17 = vsel %vm86_vm1, %v1072_v30, 0.0 }
 0x3bc   :  { %v1127_v62 = vrot.slane %v1126_v17, 4 }
 0x3be   :  { %v1128_v45 = vadd.f32 %v1127_v62, %v1126_v17  ;;  %v2919_v62 = vstv %s2890_s24 }
 0x3bf   :  { %v2866_v23 = vpop.permute.xlu1 %991  ;;  %v2868_v38 = vpop.permute.xlu0 %989 }
 0x3c0   :  { %v2870_v52 = vpop.permute.xlu2 %1055  ;;  %v1129_v54 = vrot.slane %v1128_v45, 2  ;;  %v999_v10 = vsel %vm950_vm10, %v2860_v4, %v2868_v38 }
 0x3c1   :  { %v1075_v43 = vadd.f32 %v2870_v52, %v964_v32  ;;  %v1010_v35 = vadd.f32 %v999_v10, %v913_v5 }
 0x3c2   :  { %v1130_v44 = vadd.f32 %v1129_v54, %v1128_v45 }
 0x3c3   :  { %v1174_v2 = vsel %vm86_vm1, %v1075_v43, 0.0 }
 0x3c4   :  { %v1175_v34 = vrot.slane %v1174_v2, 4  ;;  %v1131_v51 = vrot.slane %v1130_v44, 1 }
 0x3c6   :  { %v1176_v33 = vadd.f32 %v1175_v34, %v1174_v2  ;;  %v1132_v32 = vadd.f32 %v1131_v51, %v1130_v44 }
 0x3c7   :  { %v2875_v25 = vpop.permute.xlu1 %997  ;;  %v2877_v3 = vpop.permute.xlu0 %995 }
 0x3c8   :  { %v2879_v8 = vpop.permute.xlu2 %1098  ;;  %v1177_v39 = vrot.slane %v1176_v33, 2  ;;  %v1148_v4 = vadd.f32 %v2919_v62, %v1132_v32  ;;  %v1002_v5 = vsel %vm950_vm10, %v2877_v3, %v2875_v25 }
 0x3c9   :  { %v1120_v42 = vadd.f32 %v2879_v8, %v1009_v20  ;;  %v1000_v20 = vsel %vm950_vm10, %v2868_v38, %v2866_v23 }
 0x3ca   :  { %v1178_v6 = vadd.f32 %v1177_v39, %v1176_v33 }
 0x3cb   :  { %v1216_v29 = vsel %vm86_vm1, %v1120_v42, 0.0 }
 0x3cc   :  { %v1217_v30 = vrot.slane %v1216_v29, 4  ;;  %v1179_v43 = vrot.slane %v1178_v6, 1 }
 0x3ce   :  { %v1218_v2 = vadd.f32 %v1217_v30, %v1216_v29  ;;  %v1180_v12 = vadd.f32 %v1179_v43, %v1178_v6 }
 0x3cf   :  { %v1054_v50 = vpop.permute.xlu1 %1053  ;;  %v1052_v21 = vpop.permute.xlu0 %1051 }
 0x3d0   :  { %v1062_v57 = vsel %vm1061_vm11, %v1050_v15, %v1052_v21  ;;  %v1063_v1 = vsel %vm1061_vm11, %v1052_v21, %v1054_v50  ;;  %v914_v15 = vadd.f32 %v903_v22, %v2801_v60  ;;  %v2915_v17 = vpop.permute.xlu2 %1104  ;;  %v966_v60 = vadd.f32 %v954_v48, %v869_v18 }
 0x3d1   :  { %v1073_v47 = vadd.f32 %v1062_v57, %v962_v31  ;;  %v1074_v59 = vadd.f32 %v1063_v1, %v963_v55  ;;  %v1123_v46 = vadd.f32 %v2915_v17, %v1012_v27  ;;  %v1219_v49 = vrot.slane %v1218_v2, 2 }
 0x3d2   :  { %v1011_v38 = vadd.f32 %v1000_v20, %v914_v15  ;;  %v1151_v50 = vmax.f32 %v1148_v4, 0.0  ;;  %v2942_v57 = vadd.f32 %v1180_v12, %v2919_v62  ;;  %v1014_v20 = vadd.f32 %v1002_v5, %v2912_v13 }
 0x3d3   :  { %v1133_v63 = vrot.slane %v1073_v47, 4  ;;  %v1139_v40 = vsel %vm235_vm5, %v1074_v59, 0.0  ;;  %v1258_v41 = vsel %vm86_vm1, %v1123_v46, 0.0  ;;  %v1220_v1 = vadd.f32 %v1219_v49, %v1218_v2 }
 0x3d4   :  { %v1140_v24 = vrot.slane %v1139_v40, 4  ;;  %v1259_v9 = vrot.slane %v1258_v41, 4  ;;  %vm1159_vm1 = vcmask 1040384   ;;  %v1237_v5 = vstv %s2951_s25 }
 0x3d5   :  { %v1134_v16 = vadd.f32 %v1133_v63, %v1073_v47  ;;  %v1221_v2 = vrot.slane %v1220_v1, 1 }
 0x3d6   :  { %v1141_v45 = vadd.f32 %v1140_v24, %v1139_v40  ;;  %v1260_v63 = vadd.f32 %v1259_v9, %v1258_v41 }
 0x3d7   :  { %v1135_v61 = vrot.slane %v1134_v16, 2  ;;  %v1060_v34 = vpop.permute.xlu1 %1059  ;;  %v1058_v58 = vpop.permute.xlu0 %1057 }
 0x3d8   :  { %v1142_v54 = vrot.slane %v1141_v45, 2  ;;  %v1064_v26 = vsel %vm1061_vm11, %v2870_v52, %v1058_v58  ;;  %v1065_v33 = vsel %vm1061_vm11, %v1058_v58, %v1060_v34  ;;  %v1001_v52 = vsel %vm950_vm10, %v2862_v0, %v2877_v3 }
 0x3d9   :  { %v1136_v7 = vadd.f32 %v1135_v61, %v1134_v16  ;;  %v1076_v42 = vadd.f32 %v1064_v26, %v965_v14  ;;  %v1077_v28 = vadd.f32 %v1065_v33, %v966_v60  ;;  %v1013_v16 = vadd.f32 %v1001_v52, %v2905_v37 }
 0x3da   :  { %v1143_v56 = vadd.f32 %v1142_v54, %v1141_v45  ;;  %v1261_v61 = vrot.slane %v1260_v63, 2 }
 0x3db   :  { %v1137_v44 = vrot.slane %v1136_v7, 1  ;;  %v1181_v39 = vrot.slane %v1076_v42, 4  ;;  %v1187_v23 = vsel %vm235_vm5, %v1077_v28, 0.0 }
 0x3dc   :  { %v1144_v36 = vrot.slane %v1143_v56, 1  ;;  %v1188_v31 = vrot.slane %v1187_v23, 4  ;;  %v1262_v41 = vadd.f32 %v1261_v61, %v1260_v63 }
 0x3dd   :  { %v1138_v55 = vadd.f32 %v1137_v44, %v1136_v7  ;;  %v1182_v29 = vadd.f32 %v1181_v39, %v1076_v42  ;;  %v1199_v7 = vmax.f32 %v2942_v57, 0.0  ;;  %v1222_v44 = vadd.f32 %v1221_v2, %v1220_v1 }
 0x3de   :  { %v1145_v21 = vadd.f32 %v1144_v36, %v1143_v56  ;;  %v1189_v22 = vadd.f32 %v1188_v31, %v1187_v23  ;;  %v1263_v1 = vrot.slane %v1262_v41, 1 }
 0x3df   :  { %v1149_v11 = vadd.f32 %v2919_v62, %v1138_v55  ;;  %v1183_v51 = vrot.slane %v1182_v29, 2  ;;  %v1103_v0 = vpop.permute.xlu1 %1102  ;;  %v1101_v47 = vpop.permute.xlu0 %1100 }
 0x3e0   :  { %v1190_v59 = vrot.slane %v1189_v22, 2  ;;  %v1110_v25 = vsel %vm1061_vm11, %v2879_v8, %v1101_v47  ;;  %v1111_v3 = vsel %vm1061_vm11, %v1101_v47, %v1103_v0  ;;  %v1150_v53 = vadd.f32 %v2919_v62, %v1145_v21 }
 0x3e1   :  { %v1184_v6 = vadd.f32 %v1183_v51, %v1182_v29  ;;  %v1121_v30 = vadd.f32 %v1110_v25, %v1010_v35  ;;  %v1122_v18 = vadd.f32 %v1111_v3, %v1011_v38  ;;  %v1152_v19 = vmax.f32 %v1149_v11, 0.0 }
 0x3e2   :  { %v1191_v40 = vadd.f32 %v1190_v59, %v1189_v22  ;;  %v1153_v15 = vmax.f32 %v1150_v53, 0.0  ;;  %v1238_v0 = vadd.f32 %v1237_v5, %v1222_v44  ;;  %v3156_v59 = vld [vmem:[#allocation21_spill] sm:$0xff] }
 0x3e3   :  { %v1185_v48 = vrot.slane %v1184_v6, 1  ;;  %v1223_v24 = vrot.slane %v1121_v30, 4  ;;  %v1229_v27 = vsel %vm235_vm5, %v1122_v18, 0.0  ;;  %v1157_v32 = vrot.slane %v1152_v19, 7 }
 0x3e4   :  { %v1192_v8 = vrot.slane %v1191_v40, 1  ;;  %v1230_v14 = vrot.slane %v1229_v27, 4  ;;  %v1158_v43 = vrot.slane %v1153_v15, 6  ;;  %v1302_v25 = vrot.slane %v3156_v59, 4 }
 0x3e5   :  { %v1186_v45 = vadd.f32 %v1185_v48, %v1184_v6  ;;  %v1224_v60 = vadd.f32 %v1223_v24, %v1121_v30  ;;  %v1160_v10 = vsel %vm1159_vm1, %v1151_v50, %v1157_v32  ;;  %v1264_v19 = vadd.f32 %v1263_v1, %v1262_v41  ;;  %v3157_v24 = vld [vmem:[#allocation22_spill] sm:$0xff] }
 0x3e6   :  { %v1231_v46 = vadd.f32 %v1230_v14, %v1229_v27  ;;  %v1162_v34 = vsel %vm1161_vm12, %v1160_v10, %v1158_v43  ;;  %v1193_v58 = vadd.f32 %v1192_v8, %v1191_v40  ;;  %v1241_v40 = vmax.f32 %v1238_v0, 0.0 }
 0x3e7   :  { %v1225_v54 = vrot.slane %v1224_v60, 2  ;;  %v1109_v26 = vpop.permute.xlu1 %1108  ;;  %v1107_v37 = vpop.permute.xlu0 %1106  ;;  %1163 = vrot.lane.b32.xlu2 %v1162_v34, %s2016_s1  ;;  %v1197_v33 = vadd.f32 %v1186_v45, %v2919_v62  ;;  %v1304_v27 = vsel %vm1303_vm13, %v3157_v24, %v1302_v25  ;;  %v1280_v45 = vadd.f32 %v1264_v19, %v1237_v5 }
 0x3e8   :  { %v1232_v42 = vrot.slane %v1231_v46, 2  ;;  %v1112_v28 = vsel %vm1061_vm11, %v2915_v17, %v1107_v37  ;;  %v1113_v4 = vsel %vm1061_vm11, %v1107_v37, %v1109_v26  ;;  %v1198_v35 = vadd.f32 %v1193_v58, %v2919_v62 }
 0x3e9   :  { %v1226_v12 = vadd.f32 %v1225_v54, %v1224_v60  ;;  %v1124_v13 = vadd.f32 %v1112_v28, %v1013_v16  ;;  %v1125_v49 = vadd.f32 %v1113_v4, %v1014_v20  ;;  %v1200_v56 = vmax.f32 %v1197_v33, 0.0  ;;  %v3158_v60 = vld [vmem:[#allocation24_spill] sm:$0xff]  ;;  %v3159_v54 = vld [vmem:[#allocation23_spill] sm:$0xff] }
 0x3ea   :  { %v1233_v39 = vadd.f32 %v1232_v42, %v1231_v46  ;;  %v1201_v23 = vmax.f32 %v1198_v35, 0.0  ;;  %v1374_v10 = vrot.slane %v3158_v60, 4  ;;  %v1283_v58 = vmax.f32 %v1280_v45, 0.0  ;;  %v1313_v42 = vld [vmem:[#allocation13] sm:$0xf] }
 0x3eb   :  { %v1227_v38 = vrot.slane %v1226_v12, 1  ;;  %v1265_v52 = vrot.slane %v1124_v13, 4  ;;  %v1271_v36 = vsel %vm235_vm5, %v1125_v49, 0.0  ;;  %v1205_v31 = vrot.slane %v1200_v56, 7  ;;  %v1384_v28 = vld [vmem:[#allocation13] sm:$0xf] }
 0x3ec   :  { %v1234_v55 = vrot.slane %v1233_v39, 1  ;;  %v1272_v17 = vrot.slane %v1271_v36, 4  ;;  %v1206_v29 = vrot.slane %v1201_v23, 6  ;;  %v1375_v26 = vsel %vm1303_vm13, %v3159_v54, %v1374_v10  ;;  %v1451_v35 = vld [vmem:[#allocation13] sm:$0xf] }
 0x3ed   :  { %v1228_v50 = vadd.f32 %v1227_v38, %v1226_v12  ;;  %v1266_v21 = vadd.f32 %v1265_v52, %v1124_v13  ;;  %v1207_v62 = vsel %vm1159_vm1, %v1199_v7, %v1205_v31  ;;  %v3160_v4 = vmov 2   ;;  %v1343_v56 = vld [vmem:[#allocation13] sm:$0xf] }
 0x3ee   :  { %v1235_v9 = vadd.f32 %v1234_v55, %v1233_v39  ;;  %v1273_v22 = vadd.f32 %v1272_v17, %v1271_v36  ;;  %v1208_v57 = vsel %vm1161_vm12, %v1207_v62, %v1206_v29  ;;  %v3161_v12 = vmov 4   ;;  %v1422_v38 = vld [vmem:[#allocation13] sm:$0xf] }
 0x3ef   :  { %v1239_v11 = vadd.f32 %v1237_v5, %v1228_v50  ;;  %v1267_v51 = vrot.slane %v1266_v21, 2  ;;  %1209 = vrot.lane.b32.xlu0 %v1208_v57, %s2016_s1  ;;  %v3162_v13 = vmov 6   ;;  %v1168_v49 = vlaneseq  ;;  %v1515_v57 = vld [vmem:[#allocation13] sm:$0xf] }
 0x3f0   :  { %v1274_v47 = vrot.slane %v1273_v22, 2  ;;  %v1240_v3 = vadd.f32 %v1237_v5, %v1235_v9  ;;  %v3165_v52 = vmov 3   ;;  %v3166_v36 = vmov 0.0  }
 0x3f1   :  { %v1268_v53 = vadd.f32 %v1267_v51, %v1266_v21  ;;  %v1242_v6 = vmax.f32 %v1239_v11, 0.0  ;;  %vm2989_vm14 = vcmp.lt.s32.totalorder %v1168_v49, 256  ;;  %93 = vst.msk [vmem:[#allocation3] sm:$0xf] %vm92_vm6, %v3166_v36  ;;  %v3167_v31 = vmov 5  }
 0x3f2   :  { %v1275_v30 = vadd.f32 %v1274_v47, %v1273_v22  ;;  %v1243_v18 = vmax.f32 %v1240_v3, 0.0  ;;  %95 = vst.msk [vmem:[#allocation3 + $0xc] sm:$0xf] %vm94_vm8, %v3166_v36  ;;  %v3168_v50 = vmov 7   ;;  %v1545_v22 = vld [vmem:[#allocation13] sm:$0xf] }
 0x3f3   :  { %v1269_v63 = vrot.slane %v1268_v53, 1  ;;  %v1247_v15 = vrot.slane %v1242_v6, 7  ;;  %v3169_v59 = vmov 8  }
 0x3f4   :  { %v1276_v48 = vrot.slane %v1275_v30, 1  ;;  %v1248_v32 = vrot.slane %v1243_v18, 6 }
 0x3f5   :  { %v1270_v16 = vadd.f32 %v1269_v63, %v1268_v53  ;;  %v1249_v8 = vsel %vm1159_vm1, %v1241_v40, %v1247_v15 }
 0x3f6   :  { %v1277_v14 = vadd.f32 %v1276_v48, %v1275_v30  ;;  %v1250_v43 = vsel %vm1161_vm12, %v1249_v8, %v1248_v32 }
 0x3f7   :  { %v1281_v2 = vadd.f32 %v1270_v16, %v1237_v5  ;;  %1305 = vrot.lane.b32.xlu0 %v1304_v27, %s1992_s30  ;;  %1251 = vrot.lane.b32.xlu1 %v1250_v43, %s2016_s1 }
 0x3f8   :  { %v1282_v61 = vadd.f32 %v1277_v14, %v1237_v5  ;;  %v1477_v5 = vld [vmem:[#allocation13] sm:$0xf] }
 0x3f9   :  { %v1284_v46 = vmax.f32 %v1281_v2, 0.0  ;;  %v1544_v36 = vld [vmem:[#allocation3 + $0xc] sm:$0xf] }
 0x3fa   :  { %v1285_v34 = vmax.f32 %v1282_v61, 0.0 }
 0x3fb   :  { %v1289_v20 = vrot.slane %v1284_v46, 7 }
 0x3fc   :  { %v1290_v37 = vrot.slane %v1285_v34, 6 }
 0x3fd   :  { %v1291_v33 = vsel %vm1159_vm1, %v1283_v58, %v1289_v20 }
 0x3fe   :  { %v1292_v7 = vsel %vm1161_vm12, %v1291_v33, %v1290_v37 }
 0x3ff   :  { %1469 = vrot.lane.b32.xlu0 %v1375_v26, %s2003_s15  ;;  %1376 = vrot.lane.b32.xlu1 %v1375_v26, %s1994_s12 }
 0x400   :  { %1293 = vrot.lane.b32.xlu2 %v1292_v7, %s2016_s1 }
 0x407   :  { %1507 = vrot.lane.b32.xlu1 %v1304_v27, %s2008_s17  ;;  %1316 = vperm.xlu0 %1844, %v1313_v42  }
 0x408   :  { %1414 = vrot.lane.b32.xlu2 %v1304_v27, %s1988_s5 }
 0x40f   :  { %1846 = vset.pattern.permute.xlu0 %v3160_v4 }
 0x410   :  { %1575 = vrot.lane.b32.xlu2 %v1375_v26, %s2016_s1  ;;  %1387 = vperm.xlu0 %1846, %v1384_v28   ;;  %v1468_v26 = vld [vmem:[#allocation3 + $0xc] sm:$0xf] }
 0x418   :  { %1848 = vset.pattern.permute.xlu0 %v3161_v12  ;;  %1346 = vperm.xlu2 %1845, %v1343_v56   ;;  %v1506_v12 = vld [vmem:[#allocation3 + $0xc] sm:$0xf] }
 0x419   :  { %1454 = vperm.xlu0 %1848, %v1451_v35  }
 0x420   :  { %1847 = vset.pattern.permute.xlu2 %v3165_v52 }
 0x421   :  { %1850 = vset.pattern.permute.xlu0 %v3162_v13  ;;  %1425 = vperm.xlu2 %1847, %v1422_v38  }
 0x422   :  { %1518 = vperm.xlu0 %1850, %v1515_v57  }
 0x429   :  { %1849 = vset.pattern.permute.xlu2 %v3167_v31 }
 0x42a   :  { %1480 = vperm.xlu2 %1849, %v1477_v5   ;;  %1852 = vset.pattern.permute.xlu0 %v3169_v59  ;;  %v1583_v59 = vld [vmem:[#allocation13] sm:$0xf] }
 0x432   :  { %1851 = vset.pattern.permute.xlu2 %v3168_v50 }
 0x433   :  { %1548 = vperm.xlu2 %1851, %v1545_v22  }
 0x441   :  { %v1164_v44 = vpop.permute.xlu2 %1163 }
 0x442   :  { %v1165_v39 = vrot.slane %v1164_v44, 1 }
 0x444   :  { %v1166_v23 = vsel %vm89_vm4, %v1164_v44, %v1165_v39 }
 0x445   :  { %1173 = vst.msk [vmem:[#allocation3 + $0x4] ss:$4 sm:$0x3] %vm2989_vm14, %v1166_v23 }
 0x45a   :  { %v1294_v55 = vpop.permute.xlu2 %1293 }
 0x45b   :  { %v1295_v17 = vrot.slane %v1294_v55, 1 }
 0x45d   :  { %v1296_v29 = vsel %vm89_vm4, %v1294_v55, %v1295_v17 }
 0x45e   :  { %1299 = vst.msk [vmem:[#allocation3 + $0x7] ss:$4 sm:$0x3] %vm2989_vm14, %v1296_v29  ;;  %v1574_v29 = vld [vmem:[#allocation3 + $0xc] sm:$0xf] }
 0x461   :  { %v1210_v21 = vpop.permute.xlu0 %1209 }
 0x462   :  { %v1211_v62 = vrot.slane %v1210_v21, 1  ;;  %v1415_v32 = vpop.permute.xlu2 %1414 }
 0x463   :  { %v1416_v16 = vrot.slane %v1415_v32, 4 }
 0x464   :  { %v1212_v9 = vsel %vm89_vm4, %v1210_v21, %v1211_v62 }
 0x465   :  { %1215 = vst.msk [vmem:[#allocation3 + $0x5] ss:$4 sm:$0x3] %vm2989_vm14, %v1212_v9  ;;  %v1417_v60 = vsel %vm322_vm15, %v1416_v16, %v1415_v32 }
 0x469   :  { %v1252_v1 = vpop.permute.xlu1 %1251  ;;  %v1306_v0 = vpop.permute.xlu0 %1305 }
 0x46a   :  { %v1253_v11 = vrot.slane %v1252_v1, 1  ;;  %v1307_v47 = vrot.slane %v1306_v0, 4  ;;  %v1576_v55 = vpop.permute.xlu2 %1575 }
 0x46b   :  { %v1577_v50 = vrot.slane %v1576_v55, 4 }
 0x46c   :  { %v1254_v51 = vsel %vm89_vm4, %v1252_v1, %v1253_v11  ;;  %v1308_v25 = vsel %vm235_vm5, %v1307_v47, %v1306_v0 }
 0x46d   :  { %1257 = vst.msk [vmem:[#allocation3 + $0x6] ss:$4 sm:$0x3] %vm2989_vm14, %v1254_v51  ;;  %v1582_v21 = vmul.f32 %v1577_v50, %v1574_v29  ;;  %v1578_v57 = vsel %vm89_vm4, %v1577_v50, %v1576_v55 }
 0x471   :  { %v1377_v18 = vpop.permute.xlu1 %1376  ;;  %v1470_v20 = vpop.permute.xlu0 %1469 }
 0x472   :  { %v1378_v63 = vrot.slane %v1377_v18, 4  ;;  %v1471_v37 = vrot.slane %v1470_v20, 4 }
 0x474   :  { %v1300_v3 = vld [vmem:[#allocation3] sm:$0xff]  ;;  %v1301_v6 = vld [vmem:[#allocation3 + $0x8] sm:$0xf]  ;;  %v1379_v24 = vsel %vm394_vm0, %v1378_v63, %v1377_v18  ;;  %v1476_v33 = vmul.f32 %v1471_v37, %v1468_v26  ;;  %v1472_v13 = vsel %vm118_vm3, %v1471_v37, %v1470_v20 }
 0x475   :  { %v1311_v53 = vmul.f32 %v1308_v25, %v1300_v3  ;;  %v1312_v30 = vmul.f32 %v1307_v47, %v1301_v6  ;;  %v1342_v19 = vld [vmem:[#allocation3 + $0x8] sm:$0xf]  ;;  %v1382_v8 = vmul.f32 %v1379_v24, %v1300_v3  ;;  %v1420_v61 = vmul.f32 %v1417_v60, %v1300_v3  ;;  %v1347_v25 = vpop.permute.xlu2 %1346 }
 0x476   :  { %v1373_v27 = vld [vmem:[#allocation3 + $0x8] sm:$0xf] }
 0x477   :  { %1321 = vst [vmem:[#allocation1] ss:$2 sm:$0xff] %v1311_v53  ;;  %v1383_v14 = vmul.f32 %v1378_v63, %v1373_v27  ;;  %v1413_v10 = vld [vmem:[#allocation3 + $0x8] sm:$0xf] }
 0x478   :  { %1323 = vst [vmem:[#allocation1 + $0x10] ss:$2 sm:$0xff] %v1312_v30  ;;  %v1421_v46 = vmul.f32 %v1416_v16, %v1413_v10  ;;  %v1450_v7 = vld [vmem:[#allocation3 + $0x4] sm:$0xff] }
 0x479   :  { %v1508_v4 = vpop.permute.xlu1 %1507  ;;  %v1475_v44 = vmul.f32 %v1472_v13, %v1450_v7  ;;  %v1581_v1 = vmul.f32 %v1578_v57, %v1450_v7  ;;  %v1317_v6 = vpop.permute.xlu0 %1316 }
 0x47a   :  { %v1509_v49 = vrot.slane %v1508_v4, 4 }
 0x47c   :  { %v1514_v56 = vmul.f32 %v1509_v49, %v1506_v12  ;;  %v1510_v38 = vsel %vm810_vm2, %v1509_v49, %v1508_v4 }
 0x47d   :  { %v1513_v52 = vmul.f32 %v1510_v38, %v1450_v7 }
 0x47e   :  { %v1325_v40 = vld.sshfl [vmem:[#allocation1 + $0x8] sm:$0xff pattern:$0x75316420]  ;;  %v1324_v15 = vld.sshfl [vmem:[#allocation1] sm:$0xff pattern:$0x75316420] }
 0x47f   :  { %v1326_v48 = vld.sshfl [vmem:[#allocation1 + $0x10] sm:$0xff pattern:$0x75316420]  ;;  %1329 = vrot.lane.b32.xlu2 %v1325_v40, %s2016_s1  ;;  %1327 = vrot.lane.b32.xlu1 %v1324_v15, %s2016_s1  ;;  %1351 = vst [vmem:[#allocation1] ss:$2 sm:$0xff] %v1300_v3  ;;  %v1426_v3 = vpop.permute.xlu2 %1425 }
 0x480   :  { %1353 = vst [vmem:[#allocation1 + $0x10] ss:$2 sm:$0xff] %v1342_v19 }
 0x482   :  { %v1388_v18 = vpop.permute.xlu0 %1387 }
 0x486   :  { %v1354_v43 = vld.sshfl [vmem:[#allocation1] sm:$0xff pattern:$0x75316420]  ;;  %v1355_v2 = vld.sshfl [vmem:[#allocation1 + $0x8] sm:$0xff pattern:$0x75316420] }
 0x487   :  { %v1356_v45 = vld.sshfl [vmem:[#allocation1 + $0x10] sm:$0xff pattern:$0x75316420]  ;;  %1331 = vrot.lane.b32.xlu1 %v1326_v48, %s2016_s1  ;;  %1357 = vrot.lane.b32.xlu0 %v1354_v43, %s1984_s14  ;;  %1392 = vst [vmem:[#allocation1] ss:$2 sm:$0xff] %v1382_v8  ;;  %v1481_v30 = vpop.permute.xlu2 %1480 }
 0x488   :  { %1394 = vst [vmem:[#allocation1 + $0x10] ss:$2 sm:$0xff] %v1383_v14  ;;  %1361 = vrot.lane.b32.xlu2 %v1356_v45, %s1984_s14 }
 0x48b   :  { %v1455_v63 = vpop.permute.xlu0 %1454 }
 0x48e   :  { %v1395_v34 = vld.sshfl [vmem:[#allocation1] sm:$0xff pattern:$0x75316420]  ;;  %v1396_v58 = vld.sshfl [vmem:[#allocation1 + $0x8] sm:$0xff pattern:$0x75316420] }
 0x48f   :  { %v1397_v54 = vld.sshfl [vmem:[#allocation1 + $0x10] sm:$0xff pattern:$0x75316420]  ;;  %1359 = vrot.lane.b32.xlu1 %v1355_v2, %s1984_s14  ;;  %1398 = vrot.lane.b32.xlu0 %v1395_v34, %s2008_s17  ;;  %1430 = vst [vmem:[#allocation1] ss:$2 sm:$0xff] %v1420_v61  ;;  %v3045_v19 = vpop.permute.xlu2 %1548 }
 0x490   :  { %1402 = vrot.lane.b32.xlu2 %v1397_v54, %s2008_s17  ;;  %1432 = vst [vmem:[#allocation1 + $0x10] ss:$2 sm:$0xff] %v1421_v46 }
 0x494   :  { %v1519_v48 = vpop.permute.xlu0 %1518 }
 0x496   :  { %v1434_v42 = vld.sshfl [vmem:[#allocation1 + $0x8] sm:$0xff pattern:$0x75316420]  ;;  %v1433_v28 = vld.sshfl [vmem:[#allocation1] sm:$0xff pattern:$0x75316420] }
 0x497   :  { %1400 = vrot.lane.b32.xlu1 %v1396_v58, %s2008_s17  ;;  %1458 = vst [vmem:[#allocation1] ss:$2 sm:$0xff] %v1450_v7  ;;  %v1435_v35 = vld.sshfl [vmem:[#allocation1 + $0x10] sm:$0xff pattern:$0x75316420] }
 0x498   :  { %1438 = vrot.lane.b32.xlu2 %v1434_v42, %s2003_s15  ;;  %1487 = vst [vmem:[#allocation1 + $0x10] ss:$2 sm:$0xff] %v1476_v33 }
 0x49e   :  { %v3025_v41 = vld.sshfl [vmem:[#allocation1] sm:$0xff pattern:$0x75316420]  ;;  %v3027_v39 = vld.sshfl [vmem:[#allocation1 + $0x8] sm:$0xff pattern:$0x75316420] }
 0x49f   :  { %1485 = vst [vmem:[#allocation1] ss:$2 sm:$0xff] %v1475_v44  ;;  %1436 = vrot.lane.b32.xlu1 %v1433_v28, %s2003_s15  ;;  %v1490_v23 = vld.sshfl [vmem:[#allocation1 + $0x10] sm:$0xff pattern:$0x75316420]  ;;  %v1463_v28 = vmul.f32 %v3025_v41, %v1455_v63 }
 0x4a0   :  { %1525 = vst [vmem:[#allocation1 + $0x10] ss:$2 sm:$0xff] %v1514_v56 }
 0x4a6   :  { %v1489_v31 = vld.sshfl [vmem:[#allocation1 + $0x8] sm:$0xff pattern:$0x75316420]  ;;  %v1488_v5 = vld.sshfl [vmem:[#allocation1] sm:$0xff pattern:$0x75316420] }
 0x4a7   :  { %1440 = vrot.lane.b32.xlu1 %v1435_v35, %s2003_s15  ;;  %1493 = vrot.lane.b32.xlu2 %v1489_v31, %s1988_s5  ;;  %1523 = vst [vmem:[#allocation1] ss:$2 sm:$0xff] %v1513_v52  ;;  %v1528_v17 = vld.sshfl [vmem:[#allocation1 + $0x10] sm:$0xff pattern:$0x75316420] }
 0x4a8   :  { %1555 = vst [vmem:[#allocation1 + $0x10] ss:$2 sm:$0xff] %v1544_v36  ;;  %v1464_v36 = vmul.f32 %v3027_v39, %v1455_v63 }
 0x4ae   :  { %v1526_v62 = vld.sshfl [vmem:[#allocation1] sm:$0xff pattern:$0x75316420]  ;;  %v1527_v9 = vld.sshfl [vmem:[#allocation1 + $0x8] sm:$0xff pattern:$0x75316420] }
 0x4af   :  { %1495 = vrot.lane.b32.xlu1 %v1490_v23, %s1988_s5  ;;  %1533 = vrot.lane.b32.xlu2 %v1528_v17, %s1994_s12  ;;  %1553 = vst [vmem:[#allocation1] ss:$2 sm:$0xff] %v1450_v7  ;;  %v1558_v22 = vld.sshfl [vmem:[#allocation1 + $0x10] sm:$0xff pattern:$0x75316420] }
 0x4b0   :  { %1529 = vrot.lane.b32.xlu0 %v1526_v62, %s1994_s12  ;;  %1593 = vst [vmem:[#allocation1 + $0x10] ss:$2 sm:$0xff] %v1582_v21 }
 0x4b6   :  { %v1556_v11 = vld.sshfl [vmem:[#allocation1] sm:$0xff pattern:$0x75316420]  ;;  %v1557_v51 = vld.sshfl [vmem:[#allocation1 + $0x8] sm:$0xff pattern:$0x75316420] }
 0x4b7   :  { %1491 = vrot.lane.b32.xlu1 %v1488_v5, %s1988_s5  ;;  %1561 = vrot.lane.b32.xlu2 %v1557_v51, %s2006_s16  ;;  %1591 = vst [vmem:[#allocation1] ss:$2 sm:$0xff] %v1581_v1  ;;  %v1596_v0 = vld.sshfl [vmem:[#allocation1 + $0x10] sm:$0xff pattern:$0x75316420] }
 0x4be   :  { %v1594_v47 = vld.sshfl [vmem:[#allocation1] sm:$0xff pattern:$0x75316420]  ;;  %v1595_v53 = vld.sshfl [vmem:[#allocation1 + $0x8] sm:$0xff pattern:$0x75316420] }
 0x4bf   :  { %1531 = vrot.lane.b32.xlu1 %v1527_v9, %s1994_s12  ;;  %1597 = vrot.lane.b32.xlu0 %v1594_v47, %s1992_s30 }
 0x4c0   :  { %1601 = vrot.lane.b32.xlu2 %v1596_v0, %s1992_s30 }
 0x4c7   :  { %1563 = vrot.lane.b32.xlu1 %v1558_v22, %s2006_s16  ;;  %1586 = vperm.xlu0 %1852, %v1583_v59  }
 0x4cf   :  { %1559 = vrot.lane.b32.xlu1 %v1556_v11, %s2006_s16 }
 0x4d7   :  { %1599 = vrot.lane.b32.xlu1 %v1595_v53, %s1992_s30  ;;  %s1747_s30 = sshll.u32 %s3086_s8, 4  ;;  %s1748_s30 = int_to_ptr.hbm [resolvable:$true] %s1747_s30 }
 0x4d9   :  { %v1330_v15 = vpop.permute.xlu2 %1329 }
 0x4e2   :  { %v1362_v27 = vpop.permute.xlu2 %1361 }
 0x4ea   :  { %v1403_v8 = vpop.permute.xlu2 %1402 }
 0x4f1   :  { %v1328_v40 = vpop.permute.xlu1 %1327 }
 0x4f2   :  { %v1333_v45 = vsel %vm89_vm4, %v1328_v40, %v1330_v15  ;;  %v1439_v34 = vpop.permute.xlu2 %1438 }
 0x4f3   :  { %v1337_v61 = vmul.f32 %v1333_v45, %v1317_v6 }
 0x4f9   :  { %v1332_v24 = vpop.permute.xlu1 %1331  ;;  %v1358_v32 = vpop.permute.xlu0 %1357 }
 0x4fa   :  { %v1334_v7 = vsel %vm89_vm4, %v1330_v15, %v1332_v24 }
 0x4fb   :  { %v1338_v12 = vmul.f32 %v1334_v7, %v1317_v6 }
 0x501   :  { %v1360_v16 = vpop.permute.xlu1 %1359  ;;  %v1399_v2 = vpop.permute.xlu0 %1398 }
 0x502   :  { %v1364_v43 = vsel %vm1363_vm9, %v1358_v32, %v1360_v16  ;;  %v1365_v54 = vsel %vm1363_vm9, %v1360_v16, %v1362_v27  ;;  %v1494_v55 = vpop.permute.xlu2 %1493 }
 0x503   :  { %v1368_v10 = vmul.f32 %v1364_v43, %v1347_v25  ;;  %v1369_v4 = vmul.f32 %v1365_v54, %v1347_v25 }
 0x505   :  { %v1370_v58 = vadd.f32 %v1368_v10, %v1337_v61  ;;  %v1371_v56 = vadd.f32 %v1369_v4, %v1338_v12 }
 0x509   :  { %v1401_v14 = vpop.permute.xlu1 %1400 }
 0x50a   :  { %v1404_v60 = vsel %vm810_vm2, %v1399_v2, %v1401_v14  ;;  %v1405_v42 = vsel %vm810_vm2, %v1401_v14, %v1403_v8  ;;  %v1534_v1 = vpop.permute.xlu2 %1533 }
 0x50b   :  { %v1408_v46 = vmul.f32 %v1404_v60, %v1388_v18  ;;  %v1409_v13 = vmul.f32 %v1405_v42, %v1388_v18 }
 0x50d   :  { %v1410_v37 = vadd.f32 %v1408_v46, %v1370_v58  ;;  %v1411_v38 = vadd.f32 %v1409_v13, %v1371_v56 }
 0x511   :  { %v1437_v20 = vpop.permute.xlu1 %1436 }
 0x512   :  { %v1442_v26 = vsel %vm118_vm3, %v1437_v20, %v1439_v34  ;;  %v1562_v47 = vpop.permute.xlu2 %1561 }
 0x513   :  { %v1446_v33 = vmul.f32 %v1442_v26, %v1426_v3 }
 0x515   :  { %v1448_v35 = vadd.f32 %v1446_v33, %v1410_v37 }
 0x517   :  { %v1465_v49 = vadd.f32 %v1463_v28, %v1448_v35 }
 0x519   :  { %v1441_v44 = vpop.permute.xlu1 %1440 }
 0x51a   :  { %v1443_v23 = vsel %vm118_vm3, %v1439_v34, %v1441_v44  ;;  %v1602_v15 = vpop.permute.xlu2 %1601 }
 0x51b   :  { %v1447_v52 = vmul.f32 %v1443_v23, %v1426_v3 }
 0x51d   :  { %v1449_v31 = vadd.f32 %v1447_v52, %v1411_v38 }
 0x51f   :  { %v1466_v5 = vadd.f32 %v1464_v36, %v1449_v31 }
 0x521   :  { %v1496_v17 = vpop.permute.xlu1 %1495 }
 0x522   :  { %v1498_v29 = vsel %vm322_vm15, %v1494_v55, %v1496_v17  ;;  %v1530_v11 = vpop.permute.xlu0 %1529 }
 0x523   :  { %v1502_v41 = vmul.f32 %v1498_v29, %v1481_v30 }
 0x525   :  { %v1504_v50 = vadd.f32 %v1502_v41, %v1466_v5 }
 0x529   :  { %v1492_v21 = vpop.permute.xlu1 %1491 }
 0x52a   :  { %v1497_v62 = vsel %vm322_vm15, %v1492_v21, %v1494_v55 }
 0x52b   :  { %v1501_v9 = vmul.f32 %v1497_v62, %v1481_v30 }
 0x52d   :  { %v1503_v22 = vadd.f32 %v1501_v9, %v1465_v49 }
 0x531   :  { %v1532_v57 = vpop.permute.xlu1 %1531  ;;  %v1598_v0 = vpop.permute.xlu0 %1597 }
 0x532   :  { %v1535_v59 = vsel %vm394_vm0, %v1530_v11, %v1532_v57  ;;  %v1536_v25 = vsel %vm394_vm0, %v1532_v57, %v1534_v1 }
 0x533   :  { %v1539_v6 = vmul.f32 %v1535_v59, %v1519_v48  ;;  %v1540_v18 = vmul.f32 %v1536_v25, %v1519_v48  ;;  %v1873_v59 = vld [vmem:[#allocation6 + $0x10] sm:$0xff]  ;;  %v3171_v25 = vld [vmem:[#allocation37_spill] sm:$0xff] }
 0x535   :  { %v1541_v24 = vadd.f32 %v1539_v6, %v1503_v22  ;;  %v1542_v27 = vadd.f32 %v1540_v18, %v1504_v50 }
 0x539   :  { %v1564_v51 = vpop.permute.xlu1 %1563  ;;  %v1587_v40 = vpop.permute.xlu0 %1586 }
 0x53a   :  { %v1566_v3 = vsel %vm548_vm7, %v1562_v47, %v1564_v51  ;;  %v1872_v51 = vld [vmem:[#allocation6] sm:$0xff] }
 0x53b   :  { %v1570_v30 = vmul.f32 %v1566_v3, %v3045_v19  ;;  %v1732_v3 = vmul.f32 %v1873_v59, %v3171_v25 }
 0x53d   :  { %v1572_v43 = vadd.f32 %v1570_v30, %v1542_v27  ;;  %v1874_v30 = vld [vmem:[#allocation6 + $0x8] sm:$0xff] }
 0x541   :  { %v1560_v39 = vpop.permute.xlu1 %1559 }
 0x542   :  { %v1565_v53 = vsel %vm548_vm7, %v1560_v39, %v1562_v47 }
 0x543   :  { %v1569_v63 = vmul.f32 %v1565_v53, %v3045_v19  ;;  %v1620_v19 = vstv %s3081_s3  ;;  %s2020_s3 = smov [#allocation15]  }
 0x544   :  { %s1745_s27 = sshll.u32 %s2020_s3, 4  ;;  %s1746_s27 = int_to_ptr.vmem [resolvable:$true] %s1745_s27 }
 0x545   :  { %v1571_v14 = vadd.f32 %v1569_v63, %v1541_v24 }
 0x549   :  { %v1600_v32 = vpop.permute.xlu1 %1599 }
 0x54a   :  { %v1603_v16 = vsel %vm235_vm5, %v1598_v0, %v1600_v32  ;;  %v1604_v8 = vsel %vm235_vm5, %v1600_v32, %v1602_v15  ;;  %v3170_v0 = vld [vmem:[#allocation36_spill] sm:$0xff] }
 0x54b   :  { %v1607_v2 = vmul.f32 %v1603_v16, %v1587_v40  ;;  %v1608_v45 = vmul.f32 %v1604_v8, %v1587_v40  ;;  %v1671_v47 = vmul.f32 %v1872_v51, %v3170_v0  ;;  %v1672_v63 = vmul.f32 %v1874_v30, %v3170_v0  ;;  %v1875_v40 = vld [vmem:[#allocation6 + $0x18] sm:$0xff] }
 0x54c   :  { %v1733_v15 = vmul.f32 %v1875_v40, %v3171_v25 }
 0x54d   :  { %v1609_v60 = vadd.f32 %v1607_v2, %v1571_v14  ;;  %v1610_v10 = vadd.f32 %v1608_v45, %v1572_v43 }
 0x54f   :  { %v1613_v48 = vrot.slane %v1609_v60, 2  ;;  %v1614_v61 = vrot.slane %v1610_v10, 2 }
 0x551   :  { %v1617_v46 = vadd.f32 %v1613_v48, %v1609_v60  ;;  %v1618_v34 = vadd.f32 %v1614_v61, %v1610_v10 }
 0x553   :  { %v1621_v58 = vadd.f32 %v1620_v19, %v1617_v46  ;;  %v1622_v20 = vadd.f32 %v1620_v19, %v1618_v34 }
 0x555   :  { %v1623_v54 = vand.u32 2147483647, %v1621_v58  ;;  %v1624_v26 = vand.u32 2147483647, %v1622_v20  ;;  %vm1663_vm11 = vcmp.ge.f32.partialorder %v1621_v58, 0.0  ;;  %vm1664_vm1 = vcmp.ge.f32.partialorder %v1622_v20, 0.0 }
 0x557   :  { %v1625_v37 = vsub.f32 0.0, %v1623_v54  ;;  %v1626_v33 = vsub.f32 0.0, %v1624_v26 }
 0x559   :  { %v1627_v7 = vmul.f32 1.442695, %v1625_v37  ;;  %v1629_v42 = vmul.f32 1.442695, %v1626_v33 }
 0x55b   :  { %1863 = vpow2.f32 %v1627_v7 }
 0x55c   :  { %1865 = vpow2.f32 %v1629_v42 }
 0x561   :  { %v1864_v28 = vpop.eup %1863 }
 0x562   :  { %v1866_v4 = vpop.eup %1865  ;;  %v1631_v35 = vadd.f32 1.0, %v1864_v28 }
 0x563   :  { %v1632_v12 = vadd.f32 1.0, %v1866_v4 }
 0x564   :  { %1867 = vrcp.f32 %v1631_v35  ;;  %v1644_v38 = vand.u32 2147483648, %v1631_v35  ;;  %v1642_v31 = vand.u32 2147483647, %v1631_v35  ;;  %vm1638_vm15 = vweird.f32 %v1631_v35 }
 0x565   :  { %1869 = vrcp.f32 %v1632_v12  ;;  %v1659_v5 = vand.u32 2147483648, %v1632_v12  ;;  %v1657_v17 = vand.u32 2147483647, %v1632_v12  ;;  %vm1653_vm2 = vweird.f32 %v1632_v12 }
 0x566   :  { %v1645_v41 = vor.u32 1.1754944e-38, %v1644_v38  ;;  %vm1643_vm5 = vcmp.eq.f32.partialorder %v1642_v31, 8.507059e+37 }
 0x567   :  { %v1660_v62 = vor.u32 1.1754944e-38, %v1659_v5  ;;  %vm1658_vm10 = vcmp.eq.f32.partialorder %v1657_v17, 8.507059e+37 }
 0x56a   :  { %v1868_v13 = vpop.eup %1867 }
 0x56b   :  { %v1870_v49 = vpop.eup %1869  ;;  %v1634_v56 = vmul.f32 %v1868_v13, %v1631_v35  ;;  %vm1639_vm3 = vweird.f32 %v1868_v13 }
 0x56c   :  { %v1649_v44 = vmul.f32 %v1870_v49, %v1632_v12  ;;  %vm1654_vm4 = vweird.f32 %v1870_v49  ;;  %vm1640_vm0 = vmor %vm1638_vm15, %vm1639_vm3 }
 0x56d   :  { %v1635_v23 = vsub.f32 1.0, %v1634_v56  ;;  %vm1655_vm7 = vmor %vm1653_vm2, %vm1654_vm4 }
 0x56e   :  { %v1650_v52 = vsub.f32 1.0, %v1649_v44 }
 0x56f   :  { %v1636_v36 = vmul.f32 %v1868_v13, %v1635_v23 }
 0x570   :  { %v1651_v55 = vmul.f32 %v1870_v49, %v1650_v52 }
 0x571   :  { %v1637_v29 = vadd.f32 %v1868_v13, %v1636_v36 }
 0x572   :  { %v1652_v50 = vadd.f32 %v1870_v49, %v1651_v55 }
 0x573   :  { %v1641_v21 = vsel %vm1640_vm0, %v1868_v13, %v1637_v29 }
 0x574   :  { %v1646_v9 = vsel %vm1643_vm5, %v1645_v41, %v1641_v21  ;;  %v1656_v22 = vsel %vm1655_vm7, %v1870_v49, %v1652_v50 }
 0x575   :  { %v1661_v57 = vsel %vm1658_vm10, %v1660_v62, %v1656_v22  ;;  %v1665_v1 = vmul.f32 %v1864_v28, %v1646_v9 }
 0x576   :  { %v1666_v11 = vmul.f32 %v1866_v4, %v1661_v57 }
 0x577   :  { %v1667_v39 = vsel %vm1663_vm11, %v1646_v9, %v1665_v1 }
 0x578   :  { %v1668_v53 = vsel %vm1664_vm1, %v1661_v57, %v1666_v11  ;;  %v1673_v6 = vperm.slane %v1667_v39, 0  ;;  %v1734_v18 = vperm.slane %v1667_v39, 1 }
 0x579   :  { %v1674_v24 = vperm.slane %v1668_v53, 0  ;;  %v1735_v27 = vperm.slane %v1668_v53, 1 }
 0x57a   :  { %v1675_v32 = vmul.f32 %v1673_v6, %v1671_v47  ;;  %v1736_v16 = vmul.f32 %v1734_v18, %v1732_v3 }
 0x57b   :  { %v1676_v8 = vmul.f32 %v1674_v24, %v1672_v63  ;;  %v1737_v14 = vmul.f32 %v1735_v27, %v1733_v15 }
 0x57c   :  { %1677 = vst [vmem:[#allocation15] sm:$0xff] %v1675_v32 }
 0x57d   :  { %1678 = vst [vmem:[#allocation15 + $0x8] sm:$0xff] %v1676_v8 }
 0x57e   :  { %1739 = vst [vmem:[#allocation15 + $0x10] sm:$0xff] %v1736_v16 }
 0x57f   :  { %1740 = vst [vmem:[#allocation15 + $0x18] sm:$0xff] %v1737_v14 }
 0x580   :  { %1753 = dma.vmem_to_hbm [thread:$0]  %s1746_s27, 512, %s1748_s30, [#allocation8], %s1983_s13, %s1983_s13, %s1984_s14  }
 0x581   :  { %1980 = dma.done.wait [#allocation8], 512  }
 0x582   :  { %1981 = vsyncadd [#allocation8], 4294966784 }
 0x583   :  { %1758 = vsyncpa [#allocation7], 1 }
 0x584   :  { %1759 = vsyncpa [#allocation14], 1 }
 0x585   :  { %1760 = vsyncpa [#allocation8], 1 }
 0x586   :  { %1761 = vsyncpa [#allocation9], 1 }
 0x587   :  { %1762 = vsyncpa [#allocation12], 1 }

</bundles_post_ra>
